<compile_context>
chip_gen: v7x
topology: tpu7x:2x2x1
jax: 0.10.0
libtpu: 0.0.40
codegen_flags: <defaults>
</compile_context>

<pallas_src>
import jax
import jax.numpy as jnp
from jax.experimental import pallas as pl
from jax.experimental.pallas import tpu as pltpu  # noqa: F401  (TPU backend)

N, CIN, H, W = 1, 480, 14, 14
COUT = 112
EPS = 1e-3
M_ROWS = N * H * W          # 196 pixels = BN reduction size


def _fused_kernel(gate_ref, x_ref, w_ref, gamma_ref, beta_ref, o_ref):
    # gate_ref  : (1, CIN)       f32   -- x117 squeezed
    # x_ref     : (CIN, M_ROWS)  f32   -- x113 NCHW-flattened (pure reshape)
    # w_ref     : (COUT, CIN)    bf16  -- 1x1 conv weight (pre-cast parameter)
    # gamma_ref, beta_ref : (COUT, 1) f32
    # o_ref     : (COUT, M_ROWS) f32

    # Hardsigmoid on the gate: relu6(x + 3)/6 == clip(x/6 + 0.5, 0, 1)  (f32 VPU).
    hs = jnp.clip(gate_ref[...] * (1.0 / 6.0) + 0.5, 0.0, 1.0)      # (1, CIN)

    # Fold the per-input-channel gate into the *small* weight (112x480) instead
    # of scaling the 480x196 activations; single bf16 pack of the result.
    w_scaled = (w_ref[...] * hs).astype(jnp.bfloat16)               # (COUT, CIN)

    # 1x1 conv as one MXU matmul: bf16 operands, f32 accumulation.  The f32->bf16
    # cast of x happens in-kernel (VMEM), not as a standalone XLA op.
    y = jnp.dot(w_scaled, x_ref[...].astype(jnp.bfloat16),
                preferred_element_type=jnp.float32)                  # (COUT, M)

    # Stage y through the output VMEM buffer so the BN passes re-load it instead
    # of keeping y / y*y / normalize temps all live in vregs.
    o_ref[...] = y

    # BatchNorm2d (training mode -> batch statistics) in one pass.
    inv_n = 1.0 / M_ROWS
    y = o_ref[...]
    s1 = jnp.sum(y, axis=-1, keepdims=True)                          # (COUT, 1)
    s2 = jnp.sum(y * y, axis=-1, keepdims=True)                      # (COUT, 1)
    mean = s1 * inv_n
    var = s2 * inv_n - mean * mean            # biased variance (PyTorch training)
    inv_std = jax.lax.rsqrt(var + EPS)
    scale = inv_std * gamma_ref[...]                                 # (COUT, 1)
    shift = beta_ref[...] - mean * scale
    o_ref[...] = o_ref[...] * scale + shift


def fused_forward(x117, x113, conv_w_bf16, gamma2, beta2):
    """x117: (N,CIN,1,1) f32, x113: (N,CIN,H,W) f32, conv_w_bf16: (COUT,CIN) bf16,
    gamma2/beta2: (COUT,1) f32.  Returns (N, COUT, H, W) f32."""
    # NCHW-native: pure contiguous reshapes only (no transpose / pad / cast ops
    # surrounding the single pallas_call).
    x_flat = x113.reshape(CIN, M_ROWS)
    gate = x117.reshape(1, CIN)

    cost = pl.CostEstimate(
        flops=2 * COUT * CIN * M_ROWS,
        transcendentals=COUT,
        bytes_accessed=(x_flat.size * 4 + conv_w_bf16.size * 2 + gate.size * 4
                        + gamma2.size * 4 + beta2.size * 4 + COUT * M_ROWS * 4),
    )

    out = pl.pallas_call(
        _fused_kernel,
        out_shape=jax.ShapeDtypeStruct((COUT, M_ROWS), jnp.float32),
        cost_estimate=cost,
    )(gate, x_flat, conv_w_bf16, gamma2, beta2)

    # Straight back to NCHW (contiguous reshape, no transpose).
    return out.reshape(N, COUT, H, W)

# TODO(synk): training-mode BatchNorm running_mean/running_var updates
# (momentum=0.01 side effect) are not produced by this forward-only kernel.


def _reference(x117, x113, conv_w, gamma, beta):
    hs = jnp.clip(x117 / 6.0 + 0.5, 0.0, 1.0)
    xm = hs * x113                                     # (N, CIN, H, W)
    y = jnp.einsum("nchw,oc->nohw", xm, conv_w.reshape(COUT, CIN))
    mean = jnp.mean(y, axis=(0, 2, 3), keepdims=True)
    var = jnp.mean((y - mean) ** 2, axis=(0, 2, 3), keepdims=True)
    return (y - mean) / jnp.sqrt(var + EPS) * gamma.reshape(1, COUT, 1, 1) \
        + beta.reshape(1, COUT, 1, 1)


if __name__ == "__main__":
    key = jax.random.PRNGKey(0)
    k1, k2, k3 = jax.random.split(key, 3)

    x113 = jax.random.normal(k1, (N, CIN, H, W), dtype=jnp.float32)
    x117 = jax.random.normal(k2, (N, CIN, 1, 1), dtype=jnp.float32)

    # Deterministic parameter init (synthetic, not a checkpoint load).
    fan_in = CIN  # 1x1 kernel
    bound = 1.0 / (fan_in ** 0.5)
    conv_w = jax.random.uniform(k3, (COUT, CIN, 1, 1), dtype=jnp.float32,
                                minval=-bound, maxval=bound)
    gamma = jnp.ones((COUT,), dtype=jnp.float32)
    beta = jnp.zeros((COUT,), dtype=jnp.float32)

    # One-time parameter prep, outside the jitted hot path: bf16 weight and
    # (COUT,1)-shaped BN affine params.
    conv_w_bf16 = conv_w.reshape(COUT, CIN).astype(jnp.bfloat16)
    gamma2 = gamma.reshape(COUT, 1)
    beta2 = beta.reshape(COUT, 1)

    fwd = jax.jit(fused_forward)
    out = fwd(x117, x113, conv_w_bf16, gamma2, beta2)
    jax.block_until_ready(out)

    ref = _reference(x117, x113, conv_w, gamma, beta)
    assert out.shape == (N, COUT, H, W)
    # Tolerance accounts for bf16 weight + bf16 MXU operands (f32 accumulation).
    assert jnp.allclose(out, ref, atol=2e-2, rtol=2e-2), "mismatch vs reference"

    print("KERNEL_OK")
</pallas_src>

<mosaic_0001>
module attributes {stable_mosaic.version = 11 : i64} {
  func.func @_fused_kernel(%arg0: memref<1x480xf32, #tpu.memory_space<vmem>>, %arg1: memref<480x196xf32, #tpu.memory_space<vmem>>, %arg2: memref<112x480xbf16, #tpu.memory_space<vmem>>, %arg3: memref<112x1xf32, #tpu.memory_space<vmem>>, %arg4: memref<112x1xf32, #tpu.memory_space<vmem>>, %arg5: memref<112x196xf32, #tpu.memory_space<vmem>>) attributes {dimension_semantics = [], scalar_prefetch = 0 : i64, scratch_operands = 0 : i64, tpu.core_type = #tpu.core_type<tc>} {
    %c0 = arith.constant 0 : index
    %c0_0 = arith.constant 0 : index
    %0 = vector.load %arg0[%c0, %c0_0] : memref<1x480xf32, #tpu.memory_space<vmem>>, vector<1x480xf32>
    %cst = arith.constant 0.166666672 : f32
    %1 = vector.broadcast %cst : f32 to vector<1x480xf32>
    %2 = arith.mulf %0, %1 : vector<1x480xf32>
    %cst_1 = arith.constant 5.000000e-01 : f32
    %3 = vector.broadcast %cst_1 : f32 to vector<1x480xf32>
    %4 = arith.addf %2, %3 : vector<1x480xf32>
    %cst_2 = arith.constant 0.000000e+00 : f32
    %cst_3 = arith.constant 1.000000e+00 : f32
    %5 = vector.broadcast %cst_2 : f32 to vector<1x480xf32>
    %6 = arith.maximumf %5, %4 : vector<1x480xf32>
    %7 = vector.broadcast %cst_3 : f32 to vector<1x480xf32>
    %8 = arith.minimumf %7, %6 : vector<1x480xf32>
    %c0_4 = arith.constant 0 : index
    %c0_5 = arith.constant 0 : index
    %9 = vector.load %arg2[%c0_4, %c0_5] : memref<112x480xbf16, #tpu.memory_space<vmem>>, vector<112x480xbf16>
    %10 = arith.extf %9 : vector<112x480xbf16> to vector<112x480xf32>
    %11 = vector.broadcast %8 : vector<1x480xf32> to vector<112x480xf32>
    %12 = arith.mulf %10, %11 : vector<112x480xf32>
    %13 = arith.truncf %12 : vector<112x480xf32> to vector<112x480xbf16>
    %c0_6 = arith.constant 0 : index
    %c0_7 = arith.constant 0 : index
    %14 = vector.load %arg1[%c0_6, %c0_7] : memref<480x196xf32, #tpu.memory_space<vmem>>, vector<480x196xf32>
    %15 = arith.truncf %14 : vector<480x196xf32> to vector<480x196xbf16>
    %cst_8 = arith.constant dense<0.000000e+00> : vector<112x196xf32>
    %16 = tpu.matmul %13, %15, %cst_8 {dimension_numbers = #tpu.dot_dimension_numbers<[1], [0], [0], [1], [0, 0, 1, 1], [], []>} : vector<112x480xbf16>, vector<480x196xbf16>, vector<112x196xf32> -> vector<112x196xf32>
    %c0_9 = arith.constant 0 : index
    %c0_10 = arith.constant 0 : index
    %17 = vector.load %arg5[%c0_9, %c0_10] : memref<112x196xf32, #tpu.memory_space<vmem>>, vector<112x196xf32>
    tpu.vector_store %arg5[%c0_9, %c0_10], %16 {strides = array<i32>} : memref<112x196xf32, #tpu.memory_space<vmem>>, vector<112x196xf32>,
    %c0_11 = arith.constant 0 : index
    %c0_12 = arith.constant 0 : index
    %18 = vector.load %arg5[%c0_11, %c0_12] : memref<112x196xf32, #tpu.memory_space<vmem>>, vector<112x196xf32>
    %cst_13 = arith.constant dense<0.000000e+00> : vector<112xf32>
    %19 = vector.multi_reduction <add>, %18, %cst_13 [1] : vector<112x196xf32> to vector<112xf32>
    %20 = vector.shape_cast %19 : vector<112xf32> to vector<112x1xf32>
    %21 = arith.mulf %18, %18 : vector<112x196xf32>
    %cst_14 = arith.constant dense<0.000000e+00> : vector<112xf32>
    %22 = vector.multi_reduction <add>, %21, %cst_14 [1] : vector<112x196xf32> to vector<112xf32>
    %23 = vector.shape_cast %22 : vector<112xf32> to vector<112x1xf32>
    %cst_15 = arith.constant 0.00510204071 : f32
    %24 = vector.broadcast %cst_15 : f32 to vector<112x1xf32>
    %25 = arith.mulf %20, %24 : vector<112x1xf32>
    %cst_16 = arith.constant 0.00510204071 : f32
    %26 = vector.broadcast %cst_16 : f32 to vector<112x1xf32>
    %27 = arith.mulf %23, %26 : vector<112x1xf32>
    %28 = arith.mulf %25, %25 : vector<112x1xf32>
    %29 = arith.subf %27, %28 : vector<112x1xf32>
    %cst_17 = arith.constant 1.000000e-03 : f32
    %30 = vector.broadcast %cst_17 : f32 to vector<112x1xf32>
    %31 = arith.addf %29, %30 : vector<112x1xf32>
    %32 = math.rsqrt %31 : vector<112x1xf32>
    %c0_18 = arith.constant 0 : index
    %c0_19 = arith.constant 0 : index
    %33 = vector.load %arg3[%c0_18, %c0_19] : memref<112x1xf32, #tpu.memory_space<vmem>>, vector<112x1xf32>
    %34 = arith.mulf %32, %33 : vector<112x1xf32>
    %c0_20 = arith.constant 0 : index
    %c0_21 = arith.constant 0 : index
    %35 = vector.load %arg4[%c0_20, %c0_21] : memref<112x1xf32, #tpu.memory_space<vmem>>, vector<112x1xf32>
    %36 = arith.mulf %25, %34 : vector<112x1xf32>
    %37 = arith.subf %35, %36 : vector<112x1xf32>
    %c0_22 = arith.constant 0 : index
    %c0_23 = arith.constant 0 : index
    %38 = vector.load %arg5[%c0_22, %c0_23] : memref<112x196xf32, #tpu.memory_space<vmem>>, vector<112x196xf32>
    %39 = vector.broadcast %34 : vector<112x1xf32> to vector<112x196xf32>
    %40 = arith.mulf %38, %39 : vector<112x196xf32>
    %41 = vector.broadcast %37 : vector<112x1xf32> to vector<112x196xf32>
    %42 = arith.addf %40, %41 : vector<112x196xf32>
    %c0_24 = arith.constant 0 : index
    %c0_25 = arith.constant 0 : index
    %43 = vector.load %arg5[%c0_24, %c0_25] : memref<112x196xf32, #tpu.memory_space<vmem>>, vector<112x196xf32>
    tpu.vector_store %arg5[%c0_24, %c0_25], %42 {strides = array<i32>} : memref<112x196xf32, #tpu.memory_space<vmem>>, vector<112x196xf32>,
    return
  }
}

</mosaic_0001>

<bundles_post_ra>
// kernel: fused_forward.1
= control target key start
LH: loop header
LB: loop body
LE: loop exit
PB: predicated region body
PF: predicated region fallthrough
CT: control target
= control target key end

     0   :  { %vm395_vm0 = vcmask 785408   ;;  %vm624_vm1 = vcmask 556032   ;;  %s2392_s1 = inlined_call_operand.vmem [shape: f32[480,196], index: 1, kind: input, shape index: {}]   ;;  %s2393_s0 = inlined_call_operand.vmem [shape: f32[1,480], index: 0, kind: input, shape index: {}]   ;;  %s2394_s2 = inlined_call_operand.vmem [shape: bf16[112,480], index: 2, kind: input, shape index: {}]   ;;  %s2395_s5 = inlined_call_operand.vmem [shape: f32[112,196], index: 5, kind: output, shape index: {}]   ;;  %s2396_s3 = inlined_call_operand.vmem [shape: f32[112,1], index: 3, kind: input, shape index: {}]   ;;  %s2397_s4 = inlined_call_operand.vmem [shape: f32[112,1], index: 4, kind: input, shape index: {}]  }
   0x1   :  { %v216_v0 = vld [vmem:[%s2392_s1 + $0x8] sm:$0xff]  ;;  %v218_v1 = vld [vmem:[%s2392_s1 + $0x18] sm:$0xff]  ;;  %v215_v2 = vld [vmem:[%s2392_s1] sm:$0xff] }
   0x2   :  { %v336_v3 = vpack.c.bf16 %v218_v1, %v216_v0  ;;  %v217_v4 = vld [vmem:[%s2392_s1 + $0x10] sm:$0xff]  ;;  %v220_v5 = vld [vmem:[%s2392_s1 + $0x28] sm:$0xff]  ;;  %v222_v6 = vld [vmem:[%s2392_s1 + $0x38] sm:$0xff] }
   0x3   :  { %v335_v7 = vpack.c.bf16 %v217_v4, %v215_v2  ;;  %v338_v8 = vpack.c.bf16 %v222_v6, %v220_v5  ;;  %v219_v9 = vld [vmem:[%s2392_s1 + $0x20] sm:$0xff]  ;;  %v221_v10 = vld [vmem:[%s2392_s1 + $0x30] sm:$0xff]  ;;  %v280_v11 = vld [vmem:[%s2392_s1 + $0x208] sm:$0xff] }
   0x4   :  { %417 = vmatprep.subr.bf16.mxu1 %v336_v3  ;;  %v282_v12 = vld [vmem:[%s2392_s1 + $0x218] sm:$0xff]  ;;  %v279_v13 = vld [vmem:[%s2392_s1 + $0x200] sm:$0xff]  ;;  %v281_v14 = vld [vmem:[%s2392_s1 + $0x210] sm:$0xff]  ;;  %v337_v15 = vpack.c.bf16 %v221_v10, %v219_v9 }
   0x5   :  { %418 = vmatpush1.bf16.msra.mxu1 %v335_v7  ;;  %v368_v16 = vpack.c.bf16 %v282_v12, %v280_v11  ;;  %v367_v17 = vpack.c.bf16 %v281_v14, %v279_v13  ;;  %v224_v18 = vld [vmem:[%s2392_s1 + $0x48] sm:$0xff]  ;;  %v226_v19 = vld [vmem:[%s2392_s1 + $0x58] sm:$0xff]  ;;  %v223_v20 = vld [vmem:[%s2392_s1 + $0x40] sm:$0xff] }
   0x6   :  { %419 = vmatprep.subr.bf16.mxu1 %v338_v8  ;;  %v340_v21 = vpack.c.bf16 %v226_v19, %v224_v18  ;;  %v225_v22 = vld [vmem:[%s2392_s1 + $0x50] sm:$0xff]  ;;  %v284_v23 = vld [vmem:[%s2392_s1 + $0x228] sm:$0xff]  ;;  %v286_v24 = vld [vmem:[%s2392_s1 + $0x238] sm:$0xff] }
   0x7   :  { %520 = vmatprep.subr.bf16.mxu0 %v368_v16  ;;  %v370_v25 = vpack.c.bf16 %v286_v24, %v284_v23  ;;  %v283_v26 = vld [vmem:[%s2392_s1 + $0x220] sm:$0xff]  ;;  %v285_v27 = vld [vmem:[%s2392_s1 + $0x230] sm:$0xff]  ;;  %v228_v28 = vld [vmem:[%s2392_s1 + $0x68] sm:$0xff]  ;;  %v339_v31 = vpack.c.bf16 %v225_v22, %v223_v20 }
   0x8   :  { %521 = vmatpush1.bf16.msra.mxu0 %v367_v17  ;;  %v369_v29 = vpack.c.bf16 %v285_v27, %v283_v26  ;;  %v230_v30 = vld [vmem:[%s2392_s1 + $0x78] sm:$0xff]  ;;  %v288_v32 = vld [vmem:[%s2392_s1 + $0x248] sm:$0xff]  ;;  %v287_v34 = vld [vmem:[%s2392_s1 + $0x240] sm:$0xff] }
   0x9   :  { %420 = vmatpush1.bf16.msra.mxu1 %v337_v15  ;;  %522 = vmatprep.subr.bf16.mxu0 %v370_v25  ;;  %v290_v33 = vld [vmem:[%s2392_s1 + $0x258] sm:$0xff]  ;;  %v342_v35 = vpack.c.bf16 %v230_v30, %v228_v28  ;;  %v227_v36 = vld [vmem:[%s2392_s1 + $0x60] sm:$0xff]  ;;  %v229_v37 = vld [vmem:[%s2392_s1 + $0x70] sm:$0xff] }
   0xa   :  { %421 = vmatprep.subr.bf16.mxu1 %v340_v21  ;;  %v372_v38 = vpack.c.bf16 %v290_v33, %v288_v32  ;;  %v289_v39 = vld [vmem:[%s2392_s1 + $0x250] sm:$0xff]  ;;  %v232_v40 = vld [vmem:[%s2392_s1 + $0x88] sm:$0xff]  ;;  %v234_v41 = vld [vmem:[%s2392_s1 + $0x98] sm:$0xff]  ;;  %v341_v45 = vpack.c.bf16 %v229_v37, %v227_v36 }
   0xb   :  { %v292_v42 = vld [vmem:[%s2392_s1 + $0x268] sm:$0xff]  ;;  %v371_v43 = vpack.c.bf16 %v289_v39, %v287_v34  ;;  %v294_v44 = vld [vmem:[%s2392_s1 + $0x278] sm:$0xff]  ;;  %v231_v46 = vld [vmem:[%s2392_s1 + $0x80] sm:$0xff]  ;;  %v344_v50 = vpack.c.bf16 %v234_v41, %v232_v40 }
   0xc   :  { %523 = vmatpush1.bf16.msra.mxu0 %v369_v29  ;;  %v374_v47 = vpack.c.bf16 %v294_v44, %v292_v42  ;;  %v291_v48 = vld [vmem:[%s2392_s1 + $0x260] sm:$0xff]  ;;  %v293_v49 = vld [vmem:[%s2392_s1 + $0x270] sm:$0xff]  ;;  %v296_v52 = vld [vmem:[%s2392_s1 + $0x288] sm:$0xff] }
   0xd   :  { %422 = vmatpush1.bf16.msra.mxu1 %v339_v31  ;;  %524 = vmatprep.subr.bf16.mxu0 %v372_v38  ;;  %v233_v51 = vld [vmem:[%s2392_s1 + $0x90] sm:$0xff]  ;;  %v298_v53 = vld [vmem:[%s2392_s1 + $0x298] sm:$0xff]  ;;  %v236_v54 = vld [vmem:[%s2392_s1 + $0xa8] sm:$0xff]  ;;  %v373_v56 = vpack.c.bf16 %v293_v49, %v291_v48 }
   0xe   :  { %423 = vmatprep.subr.bf16.mxu1 %v342_v35  ;;  %v238_v55 = vld [vmem:[%s2392_s1 + $0xb8] sm:$0xff]  ;;  %v343_v57 = vpack.c.bf16 %v233_v51, %v231_v46  ;;  %v235_v58 = vld [vmem:[%s2392_s1 + $0xa0] sm:$0xff]  ;;  %v376_v59 = vpack.c.bf16 %v298_v53, %v296_v52  ;;  %v297_v61 = vld [vmem:[%s2392_s1 + $0x290] sm:$0xff]  ;;  %v111_v53 = vlaneseq }
   0xf   :  { %v295_v60 = vld [vmem:[%s2392_s1 + $0x280] sm:$0xff]  ;;  %v346_v62 = vpack.c.bf16 %v238_v55, %v236_v54  ;;  %v237_v63 = vld [vmem:[%s2392_s1 + $0xb0] sm:$0xff]  ;;  %v300_v0 = vld [vmem:[%s2392_s1 + $0x2a8] sm:$0xff] }
  0x10   :  { %525 = vmatpush1.bf16.msra.mxu0 %v371_v43  ;;  %v302_v1 = vld [vmem:[%s2392_s1 + $0x2b8] sm:$0xff]  ;;  %v240_v2 = vld [vmem:[%s2392_s1 + $0xc8] sm:$0xff]  ;;  %v375_v4 = vpack.c.bf16 %v297_v61, %v295_v60  ;;  %v345_v5 = vpack.c.bf16 %v237_v63, %v235_v58  ;;  %v239_v6 = vld [vmem:[%s2392_s1 + $0xc0] sm:$0xff] }
  0x11   :  { %424 = vmatpush1.bf16.msra.mxu1 %v341_v45  ;;  %526 = vmatprep.subr.bf16.mxu0 %v374_v47  ;;  %v242_v3 = vld [vmem:[%s2392_s1 + $0xd8] sm:$0xff]  ;;  %v378_v7 = vpack.c.bf16 %v302_v1, %v300_v0  ;;  %v299_v8 = vld [vmem:[%s2392_s1 + $0x2a0] sm:$0xff]  ;;  %v301_v9 = vld [vmem:[%s2392_s1 + $0x2b0] sm:$0xff] }
  0x12   :  { %425 = vmatprep.subr.bf16.mxu1 %v344_v50  ;;  %v348_v10 = vpack.c.bf16 %v242_v3, %v240_v2  ;;  %v241_v11 = vld [vmem:[%s2392_s1 + $0xd0] sm:$0xff]  ;;  %v304_v12 = vld [vmem:[%s2392_s1 + $0x2c8] sm:$0xff]  ;;  %v306_v13 = vld [vmem:[%s2392_s1 + $0x2d8] sm:$0xff]  ;;  %v377_v16 = vpack.c.bf16 %v301_v9, %v299_v8 }
  0x13   :  { %v244_v14 = vld [vmem:[%s2392_s1 + $0xe8] sm:$0xff]  ;;  %v246_v15 = vld [vmem:[%s2392_s1 + $0xf8] sm:$0xff]  ;;  %v347_v17 = vpack.c.bf16 %v241_v11, %v239_v6  ;;  %v243_v18 = vld [vmem:[%s2392_s1 + $0xe0] sm:$0xff]  ;;  %v380_v19 = vpack.c.bf16 %v306_v13, %v304_v12 }
  0x14   :  { %527 = vmatpush1.bf16.msra.mxu0 %v373_v56  ;;  %v303_v20 = vld [vmem:[%s2392_s1 + $0x2c0] sm:$0xff]  ;;  %v305_v21 = vld [vmem:[%s2392_s1 + $0x2d0] sm:$0xff]  ;;  %v350_v22 = vpack.c.bf16 %v246_v15, %v244_v14  ;;  %v308_v24 = vld [vmem:[%s2392_s1 + $0x2e8] sm:$0xff] }
  0x15   :  { %426 = vmatpush1.bf16.msra.mxu1 %v343_v57  ;;  %528 = vmatprep.subr.bf16.mxu0 %v376_v59  ;;  %v245_v23 = vld [vmem:[%s2392_s1 + $0xf0] sm:$0xff]  ;;  %v310_v25 = vld [vmem:[%s2392_s1 + $0x2f8] sm:$0xff]  ;;  %v248_v26 = vld [vmem:[%s2392_s1 + $0x108] sm:$0xff]  ;;  %v379_v28 = vpack.c.bf16 %v305_v21, %v303_v20 }
  0x16   :  { %427 = vmatprep.subr.bf16.mxu1 %v346_v62  ;;  %v250_v27 = vld [vmem:[%s2392_s1 + $0x118] sm:$0xff]  ;;  %v349_v29 = vpack.c.bf16 %v245_v23, %v243_v18  ;;  %v247_v30 = vld [vmem:[%s2392_s1 + $0x100] sm:$0xff]  ;;  %v382_v31 = vpack.c.bf16 %v310_v25, %v308_v24  ;;  %v309_v33 = vld [vmem:[%s2392_s1 + $0x2f0] sm:$0xff] }
  0x17   :  { %v307_v32 = vld [vmem:[%s2392_s1 + $0x2e0] sm:$0xff]  ;;  %v352_v34 = vpack.c.bf16 %v250_v27, %v248_v26  ;;  %v249_v35 = vld [vmem:[%s2392_s1 + $0x110] sm:$0xff]  ;;  %v312_v36 = vld [vmem:[%s2392_s1 + $0x308] sm:$0xff] }
  0x18   :  { %529 = vmatpush1.bf16.msra.mxu0 %v375_v4  ;;  %v314_v37 = vld [vmem:[%s2392_s1 + $0x318] sm:$0xff]  ;;  %v252_v38 = vld [vmem:[%s2392_s1 + $0x128] sm:$0xff]  ;;  %v381_v40 = vpack.c.bf16 %v309_v33, %v307_v32  ;;  %v351_v41 = vpack.c.bf16 %v249_v35, %v247_v30  ;;  %v251_v42 = vld [vmem:[%s2392_s1 + $0x120] sm:$0xff]  ;;  %v1569_v4 = vshrl.u32 %v111_v53, 7 }
  0x19   :  { %428 = vmatpush1.bf16.msra.mxu1 %v345_v5  ;;  %530 = vmatprep.subr.bf16.mxu0 %v378_v7  ;;  %v254_v39 = vld [vmem:[%s2392_s1 + $0x138] sm:$0xff]  ;;  %v384_v43 = vpack.c.bf16 %v314_v37, %v312_v36  ;;  %v311_v44 = vld [vmem:[%s2392_s1 + $0x300] sm:$0xff]  ;;  %v313_v45 = vld [vmem:[%s2392_s1 + $0x310] sm:$0xff] }
  0x1a   :  { %429 = vmatprep.subr.bf16.mxu1 %v348_v10  ;;  %v354_v46 = vpack.c.bf16 %v254_v39, %v252_v38  ;;  %v253_v47 = vld [vmem:[%s2392_s1 + $0x130] sm:$0xff]  ;;  %v316_v48 = vld [vmem:[%s2392_s1 + $0x328] sm:$0xff]  ;;  %v318_v49 = vld [vmem:[%s2392_s1 + $0x338] sm:$0xff]  ;;  %v383_v52 = vpack.c.bf16 %v313_v45, %v311_v44  ;;  %v125_v23 = vsub.s32 3, %v1569_v4  ;;  %v117_v30 = vsub.s32 1, %v1569_v4 }
  0x1b   :  { %v256_v50 = vld [vmem:[%s2392_s1 + $0x148] sm:$0xff]  ;;  %v258_v51 = vld [vmem:[%s2392_s1 + $0x158] sm:$0xff]  ;;  %v353_v54 = vpack.c.bf16 %v253_v47, %v251_v42  ;;  %v255_v55 = vld [vmem:[%s2392_s1 + $0x140] sm:$0xff]  ;;  %v386_v56 = vpack.c.bf16 %v318_v49, %v316_v48 }
  0x1c   :  { %531 = vmatpush1.bf16.msra.mxu0 %v377_v16  ;;  %v315_v57 = vld [vmem:[%s2392_s1 + $0x320] sm:$0xff]  ;;  %v317_v58 = vld [vmem:[%s2392_s1 + $0x330] sm:$0xff]  ;;  %v356_v59 = vpack.c.bf16 %v258_v51, %v256_v50  ;;  %v320_v61 = vld [vmem:[%s2392_s1 + $0x348] sm:$0xff] }
  0x1d   :  { %430 = vmatpush1.bf16.msra.mxu1 %v347_v17  ;;  %532 = vmatprep.subr.bf16.mxu0 %v380_v19  ;;  %v257_v60 = vld [vmem:[%s2392_s1 + $0x150] sm:$0xff]  ;;  %v322_v62 = vld [vmem:[%s2392_s1 + $0x358] sm:$0xff]  ;;  %v260_v63 = vld [vmem:[%s2392_s1 + $0x168] sm:$0xff]  ;;  %v385_v1 = vpack.c.bf16 %v317_v58, %v315_v57  ;;  %v113_v58 = vsub.s32 0, %v1569_v4 }
  0x1e   :  { %431 = vmatprep.subr.bf16.mxu1 %v350_v22  ;;  %v262_v0 = vld [vmem:[%s2392_s1 + $0x178] sm:$0xff]  ;;  %v259_v2 = vld [vmem:[%s2392_s1 + $0x160] sm:$0xff]  ;;  %v355_v5 = vpack.c.bf16 %v257_v60, %v255_v55  ;;  %v261_v6 = vld [vmem:[%s2392_s1 + $0x170] sm:$0xff]  ;;  %v388_v7 = vpack.c.bf16 %v322_v62, %v320_v61 }
  0x1f   :  { %v21_v3 = vld [vmem:[%s2393_s0] sm:$0xf]  ;;  %v321_v9 = vld [vmem:[%s2392_s1 + $0x350] sm:$0xff]  ;;  %v358_v11 = vpack.c.bf16 %v262_v0, %v260_v63  ;;  %v264_v12 = vld [vmem:[%s2392_s1 + $0x188] sm:$0xff]  ;;  %v357_v24 = vpack.c.bf16 %v261_v6, %v259_v2 }
  0x20   :  { %533 = vmatpush1.bf16.msra.mxu0 %v379_v28  ;;  %v319_v8 = vld [vmem:[%s2392_s1 + $0x340] sm:$0xff]  ;;  %v22_v10 = vmul.f32 0.16666667, %v21_v3  ;;  %v324_v13 = vld [vmem:[%s2392_s1 + $0x368] sm:$0xff]  ;;  %v326_v14 = vld [vmem:[%s2392_s1 + $0x378] sm:$0xff] }
  0x21   :  { %432 = vmatpush1.bf16.msra.mxu1 %v349_v29  ;;  %534 = vmatprep.subr.bf16.mxu0 %v382_v31  ;;  %v266_v15 = vld [vmem:[%s2392_s1 + $0x198] sm:$0xff]  ;;  %v1595_v16 = vld [vmem:[%s2392_s1 + $0x180] sm:$0xff]  ;;  %v1600_v17 = vld [vmem:[%s2392_s1 + $0x190] sm:$0xff]  ;;  %v387_v19 = vpack.c.bf16 %v321_v9, %v319_v8  ;;  %v390_v25 = vpack.c.bf16 %v326_v14, %v324_v13 }
  0x22   :  { %433 = vmatprep.subr.bf16.mxu1 %v352_v34  ;;  %v23_v18 = vadd.f32 0.5, %v22_v10  ;;  %v323_v20 = vld [vmem:[%s2392_s1 + $0x360] sm:$0xff]  ;;  %v1608_v21 = vld [vmem:[%s2394_s2 + $0x8] sm:$0xff]  ;;  %v1613_v22 = vld [vmem:[%s2394_s2 + $0x18] sm:$0xff]  ;;  %v360_v31 = vpack.c.bf16 %v266_v15, %v264_v12  ;;  %v359_v42 = vpack.c.bf16 %v1600_v17, %v1595_v16 }
  0x23   :  { %v325_v26 = vld [vmem:[%s2392_s1 + $0x370] sm:$0xff]  ;;  %v1622_v28 = vld [vmem:[%s2394_s2] sm:$0xff]  ;;  %v268_v32 = vld [vmem:[%s2392_s1 + $0x1a8] sm:$0xff]  ;;  %v57_v39 = vunpack.c.h.bf16 %v1608_v21  ;;  %v56_v57 = vunpack.c.l.bf16 %v1608_v21  ;;  %v60_v61 = vunpack.c.l.bf16 %v1613_v22 }
  0x24   :  { %535 = vmatpush1.bf16.msra.mxu0 %v381_v40  ;;  %v24_v27 = vmax.f32 %v23_v18, 0.0  ;;  %v1627_v29 = vld [vmem:[%s2394_s2 + $0x10] sm:$0xff]  ;;  %v328_v33 = vld [vmem:[%s2392_s1 + $0x388] sm:$0xff]  ;;  %v330_v34 = vld [vmem:[%s2392_s1 + $0x398] sm:$0xff]  ;;  %v61_v40 = vunpack.c.h.bf16 %v1613_v22  ;;  %v55_v44 = vunpack.c.h.bf16 %v1622_v28  ;;  %v54_v21 = vunpack.c.l.bf16 %v1622_v28 }
  0x25   :  { %434 = vmatpush1.bf16.msra.mxu1 %v351_v41  ;;  %536 = vmatprep.subr.bf16.mxu0 %v384_v43  ;;  %v270_v35 = vld [vmem:[%s2392_s1 + $0x1b8] sm:$0xff]  ;;  %v327_v36 = vld [vmem:[%s2392_s1 + $0x380] sm:$0xff]  ;;  %v329_v37 = vld [vmem:[%s2392_s1 + $0x390] sm:$0xff]  ;;  %v121_v41 = vsub.s32 2, %v1569_v4  ;;  %v389_v43 = vpack.c.bf16 %v325_v26, %v323_v20  ;;  %v59_v45 = vunpack.c.h.bf16 %v1627_v29  ;;  %v392_v47 = vpack.c.bf16 %v330_v34, %v328_v33 }
  0x26   :  { %435 = vmatprep.subr.bf16.mxu1 %v354_v46  ;;  %v25_v38 = vmin.f32 %v24_v27, 1.0  ;;  %v267_v46 = vld [vmem:[%s2392_s1 + $0x1a0] sm:$0xff]  ;;  %v1665_v50 = vld [vmem:[%s2394_s2 + $0x28] sm:$0xff]  ;;  %v1670_v51 = vld [vmem:[%s2394_s2 + $0x38] sm:$0xff]  ;;  %v58_v22 = vunpack.c.l.bf16 %v1627_v29 }
  0x27   :  { %v269_v53 = vld [vmem:[%s2392_s1 + $0x1b0] sm:$0xff]  ;;  %v332_v55 = vld [vmem:[%s2392_s1 + $0x3a8] sm:$0xff]  ;;  %v274_v60 = vld [vmem:[%s2392_s1 + $0x1d8] sm:$0xff]  ;;  %v69_v6 = vunpack.c.h.bf16 %v1670_v51 }
  0x28   :  { %537 = vmatpush1.bf16.msra.mxu0 %v383_v52  ;;  %v1658_v48 = vrot.slane %v25_v38, %v125_v23  ;;  %v1660_v49 = vrot.slane %v25_v38, %v117_v30  ;;  %v362_v52 = vpack.c.bf16 %v270_v35, %v268_v32  ;;  %v1692_v0 = vrot.slane %v25_v38, %v121_v41  ;;  %v333_v2 = vld [vmem:[%s2392_s1 + $0x3b0] sm:$0xff]  ;;  %v271_v8 = vld [vmem:[%s2392_s1 + $0x1c0] sm:$0xff]  ;;  %v276_v17 = vld [vmem:[%s2392_s1 + $0x1e8] sm:$0xff] }
  0x29   :  { %436 = vmatpush1.bf16.msra.mxu1 %v353_v54  ;;  %538 = vmatprep.subr.bf16.mxu0 %v386_v56  ;;  %v391_v54 = vpack.c.bf16 %v329_v37, %v327_v36  ;;  %v334_v56 = vld [vmem:[%s2392_s1 + $0x3b8] sm:$0xff]  ;;  %v273_v12 = vld [vmem:[%s2392_s1 + $0x1d0] sm:$0xff]  ;;  %v1713_v14 = vld [vmem:[%s2394_s2 + $0x20] sm:$0xff]  ;;  %v1731_v23 = vrot.slane %v25_v38, %v113_v58  ;;  %v64_v35 = vunpack.c.l.bf16 %v1665_v50  ;;  %v68_v36 = vunpack.c.l.bf16 %v1670_v51 }
  0x2a   :  { %437 = vmatprep.subr.bf16.mxu1 %v356_v59  ;;  %v272_v59 = vld [vmem:[%s2392_s1 + $0x1c8] sm:$0xff]  ;;  %v134_v62 = vmul.f32 %v1658_v48, %v57_v39  ;;  %v138_v63 = vmul.f32 %v1658_v48, %v61_v40  ;;  %v132_v3 = vmul.f32 %v1660_v49, %v55_v44  ;;  %v136_v4 = vmul.f32 %v1660_v49, %v59_v45  ;;  %v1718_v15 = vld [vmem:[%s2394_s2 + $0x30] sm:$0xff]  ;;  %v278_v18 = vld [vmem:[%s2392_s1 + $0x1f8] sm:$0xff] }
  0x2b   :  { %v394_v9 = vpack.c.bf16 %v334_v56, %v332_v55  ;;  %v137_v20 = vmul.f32 %v1692_v0, %v60_v61  ;;  %v35_v26 = vld [vmem:[%s2394_s2 + $0x48] sm:$0xff]  ;;  %v363_v27 = vpack.c.bf16 %v273_v12, %v271_v8  ;;  %v63_v30 = vunpack.c.h.bf16 %v1713_v14  ;;  %v37_v29 = vld [vmem:[%s2394_s2 + $0x58] sm:$0xff]  ;;  %v275_v32 = vld [vmem:[%s2392_s1 + $0x1e0] sm:$0xff] }
  0x2c   :  { %539 = vmatpush1.bf16.msra.mxu0 %v385_v1  ;;  %v331_v1 = vld [vmem:[%s2392_s1 + $0x3a0] sm:$0xff]  ;;  %v190_v10 = vpack.c.bf16 %v138_v63, %v134_v62  ;;  %v188_v13 = vpack.c.bf16 %v136_v4, %v132_v3  ;;  %v67_v28 = vunpack.c.h.bf16 %v1718_v15  ;;  %v277_v33 = vld [vmem:[%s2392_s1 + $0x1f0] sm:$0xff]  ;;  %v73_v37 = vunpack.c.h.bf16 %v35_v26  ;;  %v39_v56 = vld [vmem:[%s2394_s2 + $0x68] sm:$0xff] }
  0x2d   :  { %438 = vmatpush1.bf16.msra.mxu1 %v355_v5  ;;  %540 = vmatprep.subr.bf16.mxu0 %v388_v7  ;;  %v65_v5 = vunpack.c.h.bf16 %v1665_v50  ;;  %v361_v7 = vpack.c.bf16 %v269_v53, %v267_v46  ;;  %v393_v16 = vpack.c.bf16 %v333_v2, %v331_v1  ;;  %v131_v38 = vmul.f32 %v1731_v23, %v54_v21  ;;  %v34_v45 = vld [vmem:[%s2394_s2 + $0x40] sm:$0xff]  ;;  %v36_v46 = vld [vmem:[%s2394_s2 + $0x50] sm:$0xff]  ;;  %v45_v21 = vld [vmem:[%s2394_s2 + $0x98] sm:$0xff] }
  0x2e   :  { %439 = vmatprep.subr.bf16.mxu1 %v358_v11  ;;  %v364_v11 = vpack.c.bf16 %v274_v60, %v272_v59  ;;  %1202 = vmatprep.mubr.msk.bf16.mxu0 %vm395_vm0, %v190_v10  ;;  %v135_v39 = vmul.f32 %v1731_v23, %v58_v22  ;;  %v77_v41 = vunpack.c.h.bf16 %v37_v29  ;;  %v144_v44 = vmul.f32 %v1660_v49, %v67_v28  ;;  %v41_v60 = vld [vmem:[%s2394_s2 + $0x78] sm:$0xff]  ;;  %v38_v8 = vld [vmem:[%s2394_s2 + $0x60] sm:$0xff] }
  0x2f   :  { %449 = vmatprep.mubr.bf16.mxu1 %v188_v13  ;;  %v141_v50 = vmul.f32 %v1692_v0, %v64_v35  ;;  %v145_v51 = vmul.f32 %v1692_v0, %v68_v36  ;;  %v66_v53 = vunpack.c.l.bf16 %v1718_v15  ;;  %v71_v58 = vunpack.c.h.bf16 %v34_v45 }
  0x30   :  { %541 = vmatpush1.bf16.msra.mxu0 %v387_v19  ;;  %v133_v19 = vmul.f32 %v1692_v0, %v56_v57  ;;  %v154_v55 = vmul.f32 %v1658_v48, %v77_v41  ;;  %v75_v59 = vunpack.c.h.bf16 %v36_v46  ;;  %v72_v62 = vunpack.c.l.bf16 %v35_v26 }
  0x31   :  { %440 = vmatpush1.bf16.msra.mxu1 %v357_v24  ;;  %542 = vmatprep.subr.bf16.mxu0 %v390_v25  ;;  %v142_v24 = vmul.f32 %v1658_v48, %v65_v5  ;;  %v146_v25 = vmul.f32 %v1658_v48, %v69_v6  ;;  %v193_v61 = vpack.c.bf16 %v145_v51, %v141_v50  ;;  %v76_v63 = vunpack.c.l.bf16 %v37_v29 }
  0x32   :  { %441 = vmatprep.subr.bf16.mxu1 %v360_v31  ;;  %v366_v31 = vpack.c.bf16 %v278_v18, %v276_v17  ;;  %v189_v34 = vpack.c.bf16 %v137_v20, %v133_v19  ;;  %v81_v1 = vunpack.c.h.bf16 %v39_v56  ;;  %v143_v3 = vmul.f32 %v1731_v23, %v66_v53  ;;  %v43_v20 = vld [vmem:[%s2394_s2 + $0x88] sm:$0xff] }
  0x33   :  { %v194_v40 = vpack.c.bf16 %v146_v25, %v142_v24  ;;  %v85_v5 = vunpack.c.h.bf16 %v41_v60  ;;  %v148_v6 = vmul.f32 %v1660_v49, %v71_v58  ;;  %v70_v10 = vunpack.c.l.bf16 %v34_v45  ;;  %v47_v45 = vld [vmem:[%s2394_s2 + $0xa8] sm:$0xff] }
  0x34   :  { %543 = vmatpush1.bf16.msra.mxu0 %v389_v43  ;;  %v140_v43 = vmul.f32 %v1660_v49, %v63_v30  ;;  %v153_v12 = vmul.f32 %v1692_v0, %v76_v63  ;;  %v158_v15 = vmul.f32 %v1658_v48, %v81_v1  ;;  %v79_v18 = vunpack.c.h.bf16 %v38_v8 }
  0x35   :  { %442 = vmatpush1.bf16.msra.mxu1 %v359_v42  ;;  %544 = vmatprep.subr.bf16.mxu0 %v392_v47  ;;  %v365_v42 = vpack.c.bf16 %v277_v33, %v275_v32  ;;  %v62_v47 = vunpack.c.l.bf16 %v1713_v14  ;;  %v74_v14 = vunpack.c.l.bf16 %v36_v46  ;;  %v147_v22 = vmul.f32 %v1731_v23, %v70_v10  ;;  %v42_v33 = vld [vmem:[%s2394_s2 + $0x80] sm:$0xff]  ;;  %v49_v46 = vld [vmem:[%s2394_s2 + $0xb8] sm:$0xff] }
  0x36   :  { %443 = vmatprep.subr.bf16.mxu1 %v362_v52  ;;  %v187_v52 = vpack.c.bf16 %v135_v39, %v131_v38  ;;  %v192_v57 = vpack.c.bf16 %v144_v44, %v140_v43  ;;  %v80_v25 = vunpack.c.l.bf16 %v39_v56  ;;  %v84_v26 = vunpack.c.l.bf16 %v41_v60  ;;  %v46_v60 = vld [vmem:[%s2394_s2 + $0xa0] sm:$0xff] }
  0x37   :  { %v139_v2 = vmul.f32 %v1731_v23, %v62_v47  ;;  %v89_v28 = vunpack.c.h.bf16 %v43_v20  ;;  %v93_v29 = vunpack.c.h.bf16 %v45_v21  ;;  %v78_v35 = vunpack.c.l.bf16 %v38_v8  ;;  %v51_v8 = vld [vmem:[%s2394_s2 + $0xc8] sm:$0xff] }
  0x38   :  { %545 = vmatpush1.bf16.msra.mxu0 %v391_v54  ;;  %v150_v54 = vmul.f32 %v1658_v48, %v73_v37  ;;  %v157_v36 = vmul.f32 %v1692_v0, %v80_v25  ;;  %v161_v37 = vmul.f32 %v1692_v0, %v84_v26  ;;  %v87_v43 = vunpack.c.h.bf16 %v42_v33 }
  0x39   :  { %444 = vmatpush1.bf16.msra.mxu1 %v361_v7  ;;  %546 = vmatprep.subr.bf16.mxu0 %v394_v9  ;;  %v152_v7 = vmul.f32 %v1660_v49, %v75_v59  ;;  %v40_v9 = vld [vmem:[%s2394_s2 + $0x70] sm:$0xff]  ;;  %v191_v13 = vpack.c.bf16 %v143_v3, %v139_v2  ;;  %v170_v41 = vmul.f32 %v1658_v48, %v93_v29  ;;  %v88_v51 = vunpack.c.l.bf16 %v43_v20  ;;  %v50_v20 = vld [vmem:[%s2394_s2 + $0xc0] sm:$0xff] }
  0x3a   :  { %445 = vmatprep.subr.bf16.mxu1 %v364_v11  ;;  %v198_v4 = vpack.c.bf16 %v154_v55, %v150_v54  ;;  %v149_v11 = vmul.f32 %v1692_v0, %v72_v62  ;;  %v83_v19 = vunpack.c.h.bf16 %v40_v9  ;;  %v82_v39 = vunpack.c.l.bf16 %v40_v9  ;;  %v53_v9 = vld [vmem:[%s2394_s2 + $0xd8] sm:$0xff] }
  0x3b   :  { %v196_v17 = vpack.c.bf16 %v152_v7, %v148_v6  ;;  %v155_v47 = vmul.f32 %v1731_v23, %v78_v35  ;;  %v201_v50 = vpack.c.bf16 %v161_v37, %v157_v36  ;;  %v97_v55 = vunpack.c.h.bf16 %v47_v45 }
  0x3c   :  { %547 = vmatpush1.bf16.msra.mxu0 %v393_v16  ;;  %v162_v16 = vmul.f32 %v1658_v48, %v85_v5  ;;  %v197_v24 = vpack.c.bf16 %v153_v12, %v149_v11  ;;  %v160_v32 = vmul.f32 %v1660_v49, %v83_v19  ;;  %v159_v53 = vmul.f32 %v1731_v23, %v82_v39 }
  0x3d   :  { %446 = vmatpush1.bf16.msra.mxu1 %v363_v27  ;;  %v151_v27 = vmul.f32 %v1731_v23, %v74_v14  ;;  %v101_v56 = vunpack.c.h.bf16 %v49_v46  ;;  %v86_v59 = vunpack.c.l.bf16 %v42_v33  ;;  %v165_v63 = vmul.f32 %v1692_v0, %v88_v51 }
  0x3e   :  { %447 = vmatprep.subr.bf16.mxu1 %v366_v31  ;;  %v202_v30 = vpack.c.bf16 %v162_v16, %v158_v15  ;;  %v156_v31 = vmul.f32 %v1660_v49, %v79_v18  ;;  %v199_v2 = vpack.c.bf16 %v159_v53, %v155_v47  ;;  %v174_v3 = vmul.f32 %v1658_v48, %v97_v55 }
  0x3f   :  { %553 = vmatmul.mubr.bf16.vlgmr.msra.gmra.mrb[0].mxu0 %v189_v34  ;;  %v44_v34 = vld [vmem:[%s2394_s2 + $0x90] sm:$0xff]  ;;  %v195_v38 = vpack.c.bf16 %v151_v27, %v147_v22  ;;  %v95_v6 = vunpack.c.h.bf16 %v46_v60  ;;  %v163_v10 = vmul.f32 %v1731_v23, %v86_v59  ;;  %v100_v14 = vunpack.c.l.bf16 %v49_v46 }
  0x40   :  { %1203 = vmatprep.mubr.msk.bf16.mxu0 %vm395_vm0, %v194_v40  ;;  %v166_v40 = vmul.f32 %v1658_v48, %v89_v28  ;;  %v91_v44 = vunpack.c.h.bf16 %v44_v34  ;;  %v90_v62 = vunpack.c.l.bf16 %v44_v34  ;;  %v105_v16 = vunpack.c.h.bf16 %v51_v8 }
  0x41   :  { %448 = vmatpush1.bf16.msra.mxu1 %v365_v42  ;;  %v200_v42 = vpack.c.bf16 %v160_v32, %v156_v31  ;;  %v172_v18 = vmul.f32 %v1660_v49, %v95_v6  ;;  %v177_v25 = vmul.f32 %v1692_v0, %v100_v14  ;;  %v94_v26 = vunpack.c.l.bf16 %v46_v60 }
  0x42   :  { %v206_v54 = vpack.c.bf16 %v170_v41, %v166_v40  ;;  %v168_v58 = vmul.f32 %v1660_v49, %v91_v44  ;;  %v167_v11 = vmul.f32 %v1731_v23, %v90_v62  ;;  %v103_v31 = vunpack.c.h.bf16 %v50_v20 }
  0x43   :  { %v104_v34 = vunpack.c.l.bf16 %v51_v8  ;;  %v108_v35 = vunpack.c.l.bf16 %v53_v9  ;;  %v171_v36 = vmul.f32 %v1731_v23, %v94_v26 }
  0x44   :  { %450 = vmatmul.mubr.bf16.vlgmr.msra.gmra.mrb[0].mxu1 %v187_v52  ;;  %v92_v52 = vunpack.c.l.bf16 %v45_v21  ;;  %v52_v21 = vld [vmem:[%s2394_s2 + $0xd0] sm:$0xff]  ;;  %v203_v22 = vpack.c.bf16 %v167_v11, %v163_v10  ;;  %v180_v39 = vmul.f32 %v1660_v49, %v103_v31 }
  0x45   :  { %459 = vmatprep.mubr.bf16.mxu1 %v192_v57  ;;  %v164_v57 = vmul.f32 %v1660_v49, %v87_v43  ;;  %v107_v32 = vunpack.c.h.bf16 %v52_v21  ;;  %v185_v41 = vmul.f32 %v1692_v0, %v108_v35  ;;  %v102_v43 = vunpack.c.l.bf16 %v50_v20 }
  0x46   :  { %v169_v1 = vmul.f32 %v1692_v0, %v92_v52  ;;  %v106_v44 = vunpack.c.l.bf16 %v52_v21 }
  0x47   :  { %563 = vmatmul.mubr.bf16.gmra.mrb[4].mxu0 %v193_v61  ;;  %v48_v61 = vld [vmem:[%s2394_s2 + $0xb0] sm:$0xff]  ;;  %v204_v5 = vpack.c.bf16 %v168_v58, %v164_v57  ;;  %v184_v40 = vmul.f32 %v1660_v49, %v107_v32  ;;  %v179_v47 = vmul.f32 %v1731_v23, %v102_v43 }
  0x48   :  { %1204 = vmatprep.mubr.msk.bf16.mxu0 %vm395_vm0, %v198_v4  ;;  %v178_v4 = vmul.f32 %v1658_v48, %v101_v56  ;;  %v99_v7 = vunpack.c.h.bf16 %v48_v61  ;;  %v205_v12 = vpack.c.bf16 %v169_v1, %v165_v63  ;;  %v98_v27 = vunpack.c.l.bf16 %v48_v61 }
  0x4a   :  { %v210_v15 = vpack.c.bf16 %v178_v4, %v174_v3  ;;  %v176_v19 = vmul.f32 %v1660_v49, %v99_v7  ;;  %v175_v37 = vmul.f32 %v1731_v23, %v98_v27 }
  0x4c   :  { %460 = vmatmul.mubr.bf16.gmra.mrb[4].mxu1 %v191_v13  ;;  %v96_v13 = vunpack.c.l.bf16 %v47_v45  ;;  %v208_v29 = vpack.c.bf16 %v176_v19, %v172_v18  ;;  %v212_v45 = vpack.c.bf16 %v184_v40, %v180_v39 }
  0x4d   :  { %469 = vmatprep.mubr.bf16.mxu1 %v196_v17  ;;  %v109_v17 = vunpack.c.h.bf16 %v53_v9 }
  0x4f   :  { %573 = vmatmul.mubr.bf16.gmra.mrb[8].mxu0 %v197_v24  ;;  %v173_v24 = vmul.f32 %v1692_v0, %v96_v13  ;;  %v186_v28 = vmul.f32 %v1658_v48, %v109_v17 }
  0x50   :  { %1205 = vmatprep.mubr.msk.bf16.mxu0 %vm395_vm0, %v202_v30  ;;  %v182_v30 = vmul.f32 %v1658_v48, %v105_v16  ;;  %v181_v48 = vmul.f32 %v1692_v0, %v104_v34 }
  0x51   :  { %v209_v33 = vpack.c.bf16 %v177_v25, %v173_v24 }
  0x52   :  { %v213_v46 = vpack.c.bf16 %v185_v41, %v181_v48 }
  0x54   :  { %470 = vmatmul.mubr.bf16.gmra.mrb[8].mxu1 %v195_v38  ;;  %v214_v38 = vpack.c.bf16 %v186_v28, %v182_v30 }
  0x55   :  { %479 = vmatprep.mubr.bf16.mxu1 %v200_v42  ;;  %v207_v42 = vpack.c.bf16 %v175_v37, %v171_v36 }
  0x57   :  { %583 = vmatmul.mubr.bf16.gmra.mrb[12].mxu0 %v201_v50  ;;  %v183_v50 = vmul.f32 %v1731_v23, %v106_v44 }
  0x58   :  { %1206 = vmatprep.mubr.msk.bf16.mxu0 %vm395_vm0, %v206_v54 }
  0x59   :  { %v211_v49 = vpack.c.bf16 %v183_v50, %v179_v47 }
  0x5c   :  { %480 = vmatmul.mubr.bf16.gmra.mrb[12].mxu1 %v199_v2 }
  0x5d   :  { %489 = vmatprep.mubr.bf16.mxu1 %v204_v5 }
  0x5f   :  { %593 = vmatmul.mubr.bf16.gmra.mrb[16].mxu0 %v205_v12 }
  0x60   :  { %1207 = vmatprep.mubr.msk.bf16.mxu0 %vm395_vm0, %v210_v15 }
  0x64   :  { %490 = vmatmul.mubr.bf16.gmra.mrb[16].mxu1 %v203_v22 }
  0x65   :  { %499 = vmatprep.mubr.bf16.mxu1 %v208_v29 }
  0x67   :  { %603 = vmatmul.mubr.bf16.gmra.mrb[20].mxu0 %v209_v33 }
  0x68   :  { %1208 = vmatprep.mubr.msk.bf16.mxu0 %vm395_vm0, %v214_v38 }
  0x6c   :  { %500 = vmatmul.mubr.bf16.gmra.mrb[20].mxu1 %v207_v42 }
  0x6d   :  { %509 = vmatprep.mubr.bf16.mxu1 %v212_v45 }
  0x6f   :  { %613 = vmatmul.mubr.bf16.gmra.mrb[24].mxu0 %v213_v46 }
  0x74   :  { %510 = vmatmul.mubr.bf16.gmra.mrb[24].mxu1 %v211_v49 }
 0x112   :  { %v554_v51 = vpop.f32.mrb[0].mxu0 }
 0x113   :  { %v556_v52 = vpop.f32.mrb[1].mxu0 }
 0x114   :  { %v558_v53 = vpop.f32.mrb[2].mxu0 }
 0x115   :  { %v560_v0 = vpop.f32.mrb[3].mxu0 }
 0x117   :  { %v451_v54 = vpop.f32.mrb[0].mxu1 }
 0x118   :  { %v1861_v55 = vadd.f32 %v554_v51, %v451_v54  ;;  %v453_v56 = vpop.f32.mrb[1].mxu1 }
 0x119   :  { %v557_v57 = vadd.f32 %v556_v52, %v453_v56  ;;  %v455_v58 = vpop.f32.mrb[2].mxu1 }
 0x11a   :  { %v1863_v59 = vadd.f32 %v558_v53, %v455_v58  ;;  %v457_v60 = vpop.f32.mrb[3].mxu1  ;;  %v564_v61 = vpop.f32.mrb[4].mxu0  ;;  %v736_v34 = vmul.f32 %v1861_v55, %v1861_v55 }
 0x11b   :  { %625 = vst.msk [vmem:[%s2395_s5 + $0x8] sm:$0xff] %vm624_vm1, %v557_v57  ;;  %v561_v23 = vadd.f32 %v560_v0, %v457_v60  ;;  %v566_v62 = vpop.f32.mrb[5].mxu0 }
 0x11c   :  { %v568_v63 = vpop.f32.mrb[6].mxu0  ;;  %v738_v21 = vmul.f32 %v1863_v59, %v1863_v59 }
 0x11d   :  { %627 = vst.msk [vmem:[%s2395_s5 + $0x18] sm:$0xff] %vm624_vm1, %v561_v23  ;;  %v570_v1 = vpop.f32.mrb[7].mxu0 }
 0x11f   :  { %v461_v2 = vpop.f32.mrb[4].mxu1 }
 0x120   :  { %v1873_v3 = vadd.f32 %v564_v61, %v461_v2  ;;  %v463_v4 = vpop.f32.mrb[5].mxu1 }
 0x121   :  { %v567_v5 = vadd.f32 %v566_v62, %v463_v4  ;;  %v465_v6 = vpop.f32.mrb[6].mxu1 }
 0x122   :  { %v1875_v7 = vadd.f32 %v568_v63, %v465_v6  ;;  %v467_v8 = vpop.f32.mrb[7].mxu1  ;;  %v1880_v9 = vld [vmem:[%s2395_s5 + $0x8] sm:$0xff]  ;;  %v574_v10 = vpop.f32.mrb[8].mxu0  ;;  %v740_v50 = vmul.f32 %v1873_v3, %v1873_v3 }
 0x123   :  { %629 = vst.msk [vmem:[%s2395_s5 + $0x28] sm:$0xff] %vm624_vm1, %v567_v5  ;;  %v571_v11 = vadd.f32 %v570_v1, %v467_v8  ;;  %v680_v12 = vsel %vm624_vm1, %v1880_v9, 0.0  ;;  %v576_v13 = vpop.f32.mrb[9].mxu0  ;;  %v737_v20 = vmul.f32 %v1880_v9, %v1880_v9 }
 0x124   :  { %v681_v14 = vadd.f32 %v680_v12, %v1861_v55  ;;  %v1892_v15 = vld [vmem:[%s2395_s5 + $0x18] sm:$0xff]  ;;  %v578_v16 = vpop.f32.mrb[10].mxu0  ;;  %v742_v61 = vmul.f32 %v1875_v7, %v1875_v7 }
 0x125   :  { %631 = vst.msk [vmem:[%s2395_s5 + $0x38] sm:$0xff] %vm624_vm1, %v571_v11  ;;  %v739_v17 = vmul.f32 %v1892_v15, %v1892_v15  ;;  %v684_v18 = vsel %vm624_vm1, %v1892_v15, 0.0  ;;  %v580_v19 = vpop.f32.mrb[11].mxu0  ;;  %v764_v31 = vsel %vm624_vm1, %v737_v20, 0.0 }
 0x126   :  { %682 = vadd.xlane.f32.xlu0 %v681_v14  ;;  %v685_v30 = vadd.f32 %v684_v18, %v1863_v59  ;;  %v765_v48 = vadd.f32 %v764_v31, %v736_v34 }
 0x127   :  { %v471_v22 = vpop.f32.mrb[8].mxu1  ;;  %v768_v24 = vsel %vm624_vm1, %v739_v17, 0.0 }
 0x128   :  { %v1907_v25 = vadd.f32 %v574_v10, %v471_v22  ;;  %v473_v26 = vpop.f32.mrb[9].mxu1  ;;  %v769_v27 = vadd.f32 %v768_v24, %v738_v21 }
 0x129   :  { %v577_v28 = vadd.f32 %v576_v13, %v473_v26  ;;  %v475_v29 = vpop.f32.mrb[10].mxu1 }
 0x12a   :  { %770 = vadd.xlane.f32.xlu1 %v769_v27  ;;  %686 = vadd.xlane.f32.xlu0 %v685_v30  ;;  %v1911_v32 = vadd.f32 %v578_v16, %v475_v29  ;;  %v477_v33 = vpop.f32.mrb[11].mxu1  ;;  %v1918_v35 = vld [vmem:[%s2395_s5 + $0x28] sm:$0xff]  ;;  %v584_v36 = vpop.f32.mrb[12].mxu0  ;;  %v744_v16 = vmul.f32 %v1907_v25, %v1907_v25 }
 0x12b   :  { %633 = vst.msk [vmem:[%s2395_s5 + $0x48] sm:$0xff] %vm624_vm1, %v577_v28  ;;  %v581_v37 = vadd.f32 %v580_v19, %v477_v33  ;;  %v688_v38 = vsel %vm624_vm1, %v1918_v35, 0.0  ;;  %v586_v39 = vpop.f32.mrb[13].mxu0  ;;  %v741_v40 = vmul.f32 %v1918_v35, %v1918_v35 }
 0x12c   :  { %v689_v41 = vadd.f32 %v688_v38, %v1873_v3  ;;  %v1932_v42 = vld [vmem:[%s2395_s5 + $0x38] sm:$0xff]  ;;  %v588_v43 = vpop.f32.mrb[14].mxu0  ;;  %v746_v28 = vmul.f32 %v1911_v32, %v1911_v32 }
 0x12d   :  { %635 = vst.msk [vmem:[%s2395_s5 + $0x58] sm:$0xff] %vm624_vm1, %v581_v37  ;;  %v772_v44 = vsel %vm624_vm1, %v741_v40, 0.0  ;;  %v692_v45 = vsel %vm624_vm1, %v1932_v42, 0.0  ;;  %v590_v46 = vpop.f32.mrb[15].mxu0  ;;  %v743_v47 = vmul.f32 %v1932_v42, %v1932_v42 }
 0x12e   :  { %766 = vadd.xlane.f32.xlu0 %v765_v48  ;;  %690 = vadd.xlane.f32.xlu1 %v689_v41  ;;  %v773_v53 = vadd.f32 %v772_v44, %v740_v50  ;;  %v693_v0 = vadd.f32 %v692_v45, %v1875_v7 }
 0x12f   :  { %v481_v49 = vpop.f32.mrb[12].mxu1  ;;  %v776_v57 = vsel %vm624_vm1, %v743_v47, 0.0 }
 0x130   :  { %v1945_v51 = vadd.f32 %v584_v36, %v481_v49  ;;  %v483_v52 = vpop.f32.mrb[13].mxu1  ;;  %v777_v5 = vadd.f32 %v776_v57, %v742_v61 }
 0x131   :  { %v587_v54 = vadd.f32 %v586_v39, %v483_v52  ;;  %v485_v56 = vpop.f32.mrb[14].mxu1 }
 0x132   :  { %774 = vadd.xlane.f32.xlu0 %v773_v53  ;;  %694 = vadd.xlane.f32.xlu1 %v693_v0  ;;  %v1949_v58 = vadd.f32 %v588_v43, %v485_v56  ;;  %v487_v60 = vpop.f32.mrb[15].mxu1  ;;  %v1956_v23 = vld [vmem:[%s2395_s5 + $0x48] sm:$0xff]  ;;  %v594_v62 = vpop.f32.mrb[16].mxu0  ;;  %v748_v33 = vmul.f32 %v1945_v51, %v1945_v51 }
 0x133   :  { %637 = vst.msk [vmem:[%s2395_s5 + $0x68] sm:$0xff] %vm624_vm1, %v587_v54  ;;  %v591_v63 = vadd.f32 %v590_v46, %v487_v60  ;;  %v696_v1 = vsel %vm624_vm1, %v1956_v23, 0.0  ;;  %v596_v2 = vpop.f32.mrb[17].mxu0  ;;  %v745_v4 = vmul.f32 %v1956_v23, %v1956_v23 }
 0x134   :  { %v697_v6 = vadd.f32 %v696_v1, %v1907_v25  ;;  %v1970_v8 = vld [vmem:[%s2395_s5 + $0x58] sm:$0xff]  ;;  %v598_v10 = vpop.f32.mrb[18].mxu0  ;;  %v750_v0 = vmul.f32 %v1949_v58, %v1949_v58 }
 0x135   :  { %639 = vst.msk [vmem:[%s2395_s5 + $0x78] sm:$0xff] %vm624_vm1, %v591_v63  ;;  %v780_v11 = vsel %vm624_vm1, %v745_v4, 0.0  ;;  %v700_v12 = vsel %vm624_vm1, %v1970_v8, 0.0  ;;  %v600_v13 = vpop.f32.mrb[19].mxu0  ;;  %v747_v14 = vmul.f32 %v1970_v8, %v1970_v8 }
 0x136   :  { %778 = vadd.xlane.f32.xlu1 %v777_v5  ;;  %698 = vadd.xlane.f32.xlu0 %v697_v6  ;;  %v781_v20 = vadd.f32 %v780_v11, %v744_v16  ;;  %v701_v21 = vadd.f32 %v700_v12, %v1911_v32 }
 0x137   :  { %v491_v17 = vpop.f32.mrb[16].mxu1  ;;  %v784_v26 = vsel %vm624_vm1, %v747_v14, 0.0 }
 0x138   :  { %v1983_v18 = vadd.f32 %v594_v62, %v491_v17  ;;  %v493_v19 = vpop.f32.mrb[17].mxu1  ;;  %v785_v39 = vadd.f32 %v784_v26, %v746_v28 }
 0x139   :  { %v597_v22 = vadd.f32 %v596_v2, %v493_v19  ;;  %v495_v24 = vpop.f32.mrb[18].mxu1 }
 0x13a   :  { %782 = vadd.xlane.f32.xlu0 %v781_v20  ;;  %702 = vadd.xlane.f32.xlu1 %v701_v21  ;;  %v1987_v27 = vadd.f32 %v598_v10, %v495_v24  ;;  %v497_v30 = vpop.f32.mrb[19].mxu1  ;;  %v1994_v29 = vld [vmem:[%s2395_s5 + $0x68] sm:$0xff]  ;;  %v604_v31 = vpop.f32.mrb[20].mxu0  ;;  %v752_v1 = vmul.f32 %v1983_v18, %v1983_v18 }
 0x13b   :  { %641 = vst.msk [vmem:[%s2395_s5 + $0x88] sm:$0xff] %vm624_vm1, %v597_v22  ;;  %v601_v34 = vadd.f32 %v600_v13, %v497_v30  ;;  %v704_v36 = vsel %vm624_vm1, %v1994_v29, 0.0  ;;  %v606_v37 = vpop.f32.mrb[21].mxu0  ;;  %v749_v38 = vmul.f32 %v1994_v29, %v1994_v29 }
 0x13c   :  { %v705_v40 = vadd.f32 %v704_v36, %v1945_v51  ;;  %v2010_v48 = vld [vmem:[%s2395_s5 + $0x78] sm:$0xff]  ;;  %v608_v41 = vpop.f32.mrb[22].mxu0  ;;  %v754_v30 = vmul.f32 %v1987_v27, %v1987_v27 }
 0x13d   :  { %643 = vst.msk [vmem:[%s2395_s5 + $0x98] sm:$0xff] %vm624_vm1, %v601_v34  ;;  %v788_v43 = vsel %vm624_vm1, %v749_v38, 0.0  ;;  %v708_v44 = vsel %vm624_vm1, %v2010_v48, 0.0  ;;  %v610_v45 = vpop.f32.mrb[23].mxu0  ;;  %v751_v46 = vmul.f32 %v2010_v48, %v2010_v48 }
 0x13e   :  { %786 = vadd.xlane.f32.xlu1 %v785_v39  ;;  %706 = vadd.xlane.f32.xlu0 %v705_v40  ;;  %v789_v47 = vadd.f32 %v788_v43, %v748_v33  ;;  %v709_v53 = vadd.f32 %v708_v44, %v1949_v58 }
 0x13f   :  { %v501_v50 = vpop.f32.mrb[20].mxu1  ;;  %v792_v57 = vsel %vm624_vm1, %v751_v46, 0.0  ;;  %v1268_v46 = vmov 0  }
 0x140   :  { %v2021_v49 = vadd.f32 %v604_v31, %v501_v50  ;;  %v503_v52 = vpop.f32.mrb[21].mxu1  ;;  %v793_v10 = vadd.f32 %v792_v57, %v750_v0  ;;  %1239 = vset.pattern.permute.xlu1 %v1268_v46  ;;  %1238 = vset.pattern.permute.xlu0 %v1268_v46 }
 0x141   :  { %v607_v54 = vadd.f32 %v606_v37, %v503_v52  ;;  %v505_v56 = vpop.f32.mrb[22].mxu1 }
 0x142   :  { %790 = vadd.xlane.f32.xlu0 %v789_v47  ;;  %710 = vadd.xlane.f32.xlu1 %v709_v53  ;;  %v2027_v60 = vadd.f32 %v608_v41, %v505_v56  ;;  %v507_v61 = vpop.f32.mrb[23].mxu1  ;;  %v2032_v62 = vld [vmem:[%s2395_s5 + $0x88] sm:$0xff]  ;;  %v614_v63 = vpop.f32.mrb[24].mxu0  ;;  %v756_v38 = vmul.f32 %v2021_v49, %v2021_v49 }
 0x143   :  { %645 = vst.msk [vmem:[%s2395_s5 + $0xa8] sm:$0xff] %vm624_vm1, %v607_v54  ;;  %v611_v2 = vadd.f32 %v610_v45, %v507_v61  ;;  %v712_v4 = vsel %vm624_vm1, %v2032_v62, 0.0  ;;  %v616_v5 = vpop.f32.mrb[25].mxu0  ;;  %v753_v6 = vmul.f32 %v2032_v62, %v2032_v62 }
 0x144   :  { %v713_v11 = vadd.f32 %v712_v4, %v1983_v18  ;;  %v2048_v12 = vld [vmem:[%s2395_s5 + $0x98] sm:$0xff]  ;;  %v618_v13 = vpop.f32.mrb[26].mxu0  ;;  %v758_v54 = vmul.f32 %v2027_v60, %v2027_v60 }
 0x145   :  { %647 = vst.msk [vmem:[%s2395_s5 + $0xb8] sm:$0xff] %vm624_vm1, %v611_v2  ;;  %v796_v14 = vsel %vm624_vm1, %v753_v6, 0.0  ;;  %v716_v16 = vsel %vm624_vm1, %v2048_v12, 0.0  ;;  %v620_v17 = vpop.f32.mrb[27].mxu0  ;;  %v755_v19 = vmul.f32 %v2048_v12, %v2048_v12 }
 0x146   :  { %794 = vadd.xlane.f32.xlu1 %v793_v10  ;;  %714 = vadd.xlane.f32.xlu0 %v713_v11  ;;  %v797_v20 = vadd.f32 %v796_v14, %v752_v1  ;;  %v717_v21 = vadd.f32 %v716_v16, %v1987_v27 }
 0x147   :  { %v511_v22 = vpop.f32.mrb[24].mxu1  ;;  %v800_v33 = vsel %vm624_vm1, %v755_v19, 0.0 }
 0x148   :  { %v2060_v24 = vadd.f32 %v614_v63, %v511_v22  ;;  %v513_v26 = vpop.f32.mrb[25].mxu1  ;;  %v801_v43 = vadd.f32 %v800_v33, %v754_v30 }
 0x149   :  { %v617_v28 = vadd.f32 %v616_v5, %v513_v26  ;;  %v515_v31 = vpop.f32.mrb[26].mxu1 }
 0x14a   :  { %798 = vadd.xlane.f32.xlu0 %v797_v20  ;;  %718 = vadd.xlane.f32.xlu1 %v717_v21  ;;  %v2065_v34 = vadd.f32 %v618_v13, %v515_v31  ;;  %v517_v36 = vpop.f32.mrb[27].mxu1  ;;  %v2070_v37 = vld [vmem:[%s2395_s5 + $0xa8] sm:$0xff]  ;;  %v760_v61 = vmul.f32 %v2060_v24, %v2060_v24 }
 0x14b   :  { %649 = vst.msk [vmem:[%s2395_s5 + $0xc8] sm:$0xff] %vm624_vm1, %v617_v28  ;;  %v621_v39 = vadd.f32 %v620_v17, %v517_v36  ;;  %v720_v40 = vsel %vm624_vm1, %v2070_v37, 0.0  ;;  %v757_v41 = vmul.f32 %v2070_v37, %v2070_v37 }
 0x14c   :  { %v721_v44 = vadd.f32 %v720_v40, %v2021_v49  ;;  %v2086_v45 = vld [vmem:[%s2395_s5 + $0xb8] sm:$0xff]  ;;  %v762_v16 = vmul.f32 %v2065_v34, %v2065_v34 }
 0x14d   :  { %651 = vst.msk [vmem:[%s2395_s5 + $0xd8] sm:$0xff] %vm624_vm1, %v621_v39  ;;  %v804_v47 = vsel %vm624_vm1, %v757_v41, 0.0  ;;  %v724_v50 = vsel %vm624_vm1, %v2086_v45, 0.0  ;;  %v759_v52 = vmul.f32 %v2086_v45, %v2086_v45 }
 0x14e   :  { %802 = vadd.xlane.f32.xlu1 %v801_v43  ;;  %722 = vadd.xlane.f32.xlu0 %v721_v44  ;;  %v805_v53 = vadd.f32 %v804_v47, %v756_v38  ;;  %v725_v0 = vadd.f32 %v724_v50, %v2027_v60 }
 0x14f   :  { %v808_v56 = vsel %vm624_vm1, %v759_v52, 0.0 }
 0x150   :  { %v809_v2 = vadd.f32 %v808_v56, %v758_v54 }
 0x152   :  { %806 = vadd.xlane.f32.xlu0 %v805_v53  ;;  %726 = vadd.xlane.f32.xlu1 %v725_v0  ;;  %v2104_v57 = vld [vmem:[%s2395_s5 + $0xc8] sm:$0xff] }
 0x153   :  { %v728_v63 = vsel %vm624_vm1, %v2104_v57, 0.0  ;;  %v761_v1 = vmul.f32 %v2104_v57, %v2104_v57 }
 0x154   :  { %v729_v4 = vadd.f32 %v728_v63, %v2060_v24  ;;  %v2116_v5 = vld [vmem:[%s2395_s5 + $0xd8] sm:$0xff] }
 0x155   :  { %v812_v6 = vsel %vm624_vm1, %v761_v1, 0.0  ;;  %v732_v10 = vsel %vm624_vm1, %v2116_v5, 0.0  ;;  %v763_v11 = vmul.f32 %v2116_v5, %v2116_v5 }
 0x156   :  { %810 = vadd.xlane.f32.xlu1 %v809_v2  ;;  %730 = vadd.xlane.f32.xlu0 %v729_v4  ;;  %v813_v13 = vadd.f32 %v812_v6, %v760_v61  ;;  %v733_v14 = vadd.f32 %v732_v10, %v2065_v34  ;;  %v905_v10 = vld [vmem:[%s2396_s3 + $0x8] sm:$0xff] }
 0x157   :  { %v816_v17 = vsel %vm624_vm1, %v763_v11, 0.0 }
 0x158   :  { %v817_v19 = vadd.f32 %v816_v17, %v762_v16 }
 0x15a   :  { %814 = vadd.xlane.f32.xlu0 %v813_v13  ;;  %734 = vadd.xlane.f32.xlu1 %v733_v14 }
 0x15e   :  { %818 = vadd.xlane.f32.xlu1 %v817_v19 }
 0x1b3   :  { %v683_v20 = vpop.xlane.xlu0 %682 }
 0x1b4   :  { %v820_v26 = vmul.f32 0.0051020407, %v683_v20 }
 0x1b6   :  { %v848_v38 = vmul.f32 %v820_v26, %v820_v26 }
 0x1b7   :  { %v771_v21 = vpop.xlane.xlu1 %770  ;;  %v687_v22 = vpop.xlane.xlu0 %686 }
 0x1b8   :  { %v821_v30 = vmul.f32 0.0051020407, %v687_v22  ;;  %v835_v28 = vmul.f32 0.0051020407, %v771_v21  ;;  %v904_v21 = vld [vmem:[%s2396_s3] sm:$0xff] }
 0x1ba   :  { %v849_v31 = vmul.f32 %v821_v30, %v821_v30 }
 0x1bb   :  { %v767_v33 = vpop.xlane.xlu0 %766  ;;  %v691_v36 = vpop.xlane.xlu1 %690 }
 0x1bc   :  { %v863_v39 = vsub.f32 %v835_v28, %v849_v31  ;;  %v834_v40 = vmul.f32 0.0051020407, %v767_v33  ;;  %v2127_v41 = vmul.f32 0.0051020407, %v691_v36 }
 0x1be   :  { %v877_v43 = vadd.f32 0.001, %v863_v39  ;;  %v862_v44 = vsub.f32 %v834_v40, %v848_v38  ;;  %v850_v46 = vmul.f32 %v2127_v41, %v2127_v41 }
 0x1bf   :  { %v775_v47 = vpop.xlane.xlu0 %774  ;;  %v695_v50 = vpop.xlane.xlu1 %694 }
 0x1c0   :  { %1240 = vrsqrt.f32 %v877_v43  ;;  %v876_v52 = vadd.f32 0.001, %v862_v44  ;;  %v836_v53 = vmul.f32 0.0051020407, %v775_v47  ;;  %v2131_v0 = vmul.f32 0.0051020407, %v695_v50 }
 0x1c1   :  { %v932_v47 = vld [vmem:[%s2397_s4] sm:$0xff] }
 0x1c2   :  { %1242 = vrsqrt.f32 %v876_v52  ;;  %v864_v54 = vsub.f32 %v836_v53, %v850_v46  ;;  %v851_v1 = vmul.f32 %v2131_v0, %v2131_v0  ;;  %v933_v46 = vld [vmem:[%s2397_s4 + $0x8] sm:$0xff] }
 0x1c3   :  { %v779_v56 = vpop.xlane.xlu1 %778  ;;  %v699_v61 = vpop.xlane.xlu0 %698 }
 0x1c4   :  { %v878_v63 = vadd.f32 0.001, %v864_v54  ;;  %v837_v2 = vmul.f32 0.0051020407, %v779_v56  ;;  %v2135_v6 = vmul.f32 0.0051020407, %v699_v61 }
 0x1c6   :  { %v865_v4 = vsub.f32 %v837_v2, %v851_v1  ;;  %1244 = vrsqrt.f32 %v878_v63  ;;  %v852_v20 = vmul.f32 %v2135_v6, %v2135_v6 }
 0x1c7   :  { %v783_v11 = vpop.xlane.xlu0 %782  ;;  %v703_v13 = vpop.xlane.xlu1 %702 }
 0x1c8   :  { %v879_v14 = vadd.f32 0.001, %v865_v4  ;;  %v838_v16 = vmul.f32 0.0051020407, %v783_v11  ;;  %v2140_v17 = vmul.f32 0.0051020407, %v703_v13 }
 0x1c9   :  { %v906_v4 = vld [vmem:[%s2396_s3 + $0x10] sm:$0xff] }
 0x1ca   :  { %v1241_v19 = vpop.eup %1240  ;;  %1246 = vrsqrt.f32 %v879_v14  ;;  %v866_v36 = vsub.f32 %v838_v16, %v852_v20  ;;  %v853_v38 = vmul.f32 %v2140_v17, %v2140_v17 }
 0x1cb   :  { %v919_v22 = vmul.f32 %v1241_v19, %v905_v10  ;;  %v787_v28 = vpop.xlane.xlu1 %786  ;;  %v707_v31 = vpop.xlane.xlu0 %706  ;;  %v907_v10 = vld [vmem:[%s2396_s3 + $0x18] sm:$0xff] }
 0x1cc   :  { %v1243_v33 = vpop.eup %1242  ;;  %v839_v39 = vmul.f32 0.0051020407, %v787_v28  ;;  %v2155_v50 = vmul.f32 0.0051020407, %v707_v31  ;;  %v880_v56 = vadd.f32 0.001, %v866_v36 }
 0x1cd   :  { %v947_v40 = vmul.f32 %v919_v22, %v821_v30  ;;  %981 = vperm.xlu1 %1239, %v919_v22   ;;  %v918_v43 = vmul.f32 %v1243_v33, %v904_v21  ;;  %v935_v31 = vld [vmem:[%s2397_s4 + $0x18] sm:$0xff] }
 0x1ce   :  { %v867_v44 = vsub.f32 %v839_v39, %v853_v38  ;;  %v854_v11 = vmul.f32 %v2155_v50, %v2155_v50 }
 0x1cf   :  { %v791_v52 = vpop.xlane.xlu0 %790  ;;  %v711_v53 = vpop.xlane.xlu1 %710  ;;  %976 = vperm.xlu0 %1238, %v918_v43   ;;  %v946_v54 = vmul.f32 %v918_v43, %v820_v26  ;;  %v961_v63 = vsub.f32 %v933_v46, %v947_v40 }
 0x1d0   :  { %v881_v61 = vadd.f32 0.001, %v867_v44  ;;  %v2157_v30 = vmul.f32 0.0051020407, %v711_v53  ;;  %v1245_v2 = vpop.eup %1244  ;;  %v840_v26 = vmul.f32 0.0051020407, %v791_v52 }
 0x1d1   :  { %v960_v1 = vsub.f32 %v932_v47, %v946_v54  ;;  %v920_v21 = vmul.f32 %v1245_v2, %v906_v4  ;;  %v934_v52 = vld [vmem:[%s2397_s4 + $0x10] sm:$0xff]  ;;  %v909_v53 = vld [vmem:[%s2396_s3 + $0x28] sm:$0xff] }
 0x1d2   :  { %1248 = vrsqrt.f32 %v881_v61  ;;  %v855_v19 = vmul.f32 %v2157_v30, %v2157_v30  ;;  %v868_v33 = vsub.f32 %v840_v26, %v854_v11 }
 0x1d3   :  { %v795_v13 = vpop.xlane.xlu1 %794  ;;  %v715_v14 = vpop.xlane.xlu0 %714  ;;  %1079 = vperm.xlu0 %1238, %v961_v63   ;;  %1074 = vperm.xlu1 %1239, %v960_v1   ;;  %1250 = vrsqrt.f32 %v880_v56  ;;  %v948_v47 = vmul.f32 %v920_v21, %v2127_v41 }
 0x1d4   :  { %v1247_v16 = vpop.eup %1246  ;;  %v841_v20 = vmul.f32 0.0051020407, %v795_v13  ;;  %v2173_v43 = vmul.f32 0.0051020407, %v715_v14  ;;  %v882_v54 = vadd.f32 0.001, %v868_v33 }
 0x1d5   :  { %v921_v22 = vmul.f32 %v1247_v16, %v907_v10  ;;  %v962_v4 = vsub.f32 %v934_v52, %v948_v47  ;;  %v937_v13 = vld [vmem:[%s2397_s4 + $0x28] sm:$0xff]  ;;  %v908_v14 = vld [vmem:[%s2396_s3 + $0x20] sm:$0xff] }
 0x1d6   :  { %v869_v28 = vsub.f32 %v841_v20, %v855_v19  ;;  %v856_v63 = vmul.f32 %v2173_v43, %v2173_v43 }
 0x1d7   :  { %v799_v36 = vpop.xlane.xlu0 %798  ;;  %v719_v38 = vpop.xlane.xlu1 %718  ;;  %986 = vperm.xlu1 %1239, %v920_v21   ;;  %v949_v39 = vmul.f32 %v921_v22, %v2131_v0 }
 0x1d8   :  { %v883_v40 = vadd.f32 0.001, %v869_v28  ;;  %v2175_v44 = vmul.f32 0.0051020407, %v719_v38  ;;  %v842_v1 = vmul.f32 0.0051020407, %v799_v36 }
 0x1d9   :  { %v963_v46 = vsub.f32 %v935_v31, %v949_v39  ;;  %v911_v38 = vld [vmem:[%s2396_s3 + $0x38] sm:$0xff] }
 0x1da   :  { %1252 = vrsqrt.f32 %v883_v40  ;;  %v857_v41 = vmul.f32 %v2175_v44, %v2175_v44 }
 0x1db   :  { %v803_v56 = vpop.xlane.xlu1 %802  ;;  %v723_v0 = vpop.xlane.xlu0 %722  ;;  %1089 = vperm.xlu0 %1238, %v963_v46   ;;  %991 = vperm.xlu1 %1239, %v921_v22   ;;  %1254 = vrsqrt.f32 %v882_v54  ;;  %v870_v22 = vsub.f32 %v842_v1, %v856_v63  ;;  %v939_v63 = vld [vmem:[%s2397_s4 + $0x38] sm:$0xff]  ;;  %v936_v1 = vld [vmem:[%s2397_s4 + $0x20] sm:$0xff] }
 0x1dc   :  { %v1249_v61 = vpop.eup %1248  ;;  %v843_v2 = vmul.f32 0.0051020407, %v803_v56  ;;  %v2194_v16 = vmul.f32 0.0051020407, %v723_v0 }
 0x1dd   :  { %v923_v10 = vmul.f32 %v1249_v61, %v909_v53  ;;  %v1251_v11 = vpop.eup %1250  ;;  %v884_v52 = vadd.f32 0.001, %v870_v22 }
 0x1de   :  { %v871_v26 = vsub.f32 %v843_v2, %v857_v41  ;;  %v922_v36 = vmul.f32 %v1251_v11, %v908_v14  ;;  %v858_v39 = vmul.f32 %v2194_v16, %v2194_v16 }
 0x1df   :  { %v807_v19 = vpop.xlane.xlu0 %806  ;;  %v727_v20 = vpop.xlane.xlu1 %726  ;;  %1084 = vperm.xlu1 %1239, %v962_v4   ;;  %v951_v21 = vmul.f32 %v923_v10, %v2140_v17 }
 0x1e0   :  { %v885_v28 = vadd.f32 0.001, %v871_v26  ;;  %v2197_v31 = vmul.f32 0.0051020407, %v727_v20  ;;  %v844_v40 = vmul.f32 0.0051020407, %v807_v19  ;;  %v950_v0 = vmul.f32 %v922_v36, %v2135_v6 }
 0x1e1   :  { %v965_v33 = vsub.f32 %v937_v13, %v951_v21  ;;  %v913_v21 = vld [vmem:[%s2396_s3 + $0x48] sm:$0xff] }
 0x1e2   :  { %1256 = vrsqrt.f32 %v885_v28  ;;  %v859_v53 = vmul.f32 %v2197_v31, %v2197_v31  ;;  %v872_v41 = vsub.f32 %v844_v40, %v858_v39  ;;  %v964_v19 = vsub.f32 %v936_v1, %v950_v0  ;;  %v915_v1 = vld [vmem:[%s2396_s3 + $0x58] sm:$0xff] }
 0x1e3   :  { %v811_v46 = vpop.xlane.xlu1 %810  ;;  %1099 = vperm.xlu0 %1238, %v965_v33   ;;  %v731_v47 = vpop.xlane.xlu0 %730  ;;  %996 = vperm.xlu1 %1239, %v922_v36   ;;  %1258 = vrsqrt.f32 %v884_v52 }
 0x1e4   :  { %v1253_v17 = vpop.eup %1252  ;;  %v845_v54 = vmul.f32 0.0051020407, %v811_v46  ;;  %v2214_v26 = vmul.f32 0.0051020407, %v731_v47  ;;  %v886_v22 = vadd.f32 0.001, %v872_v41 }
 0x1e5   :  { %v925_v56 = vmul.f32 %v1253_v17, %v911_v38  ;;  %v1255_v20 = vpop.eup %1254  ;;  %v941_v17 = vld [vmem:[%s2397_s4 + $0x48] sm:$0xff]  ;;  %v938_v41 = vld [vmem:[%s2397_s4 + $0x30] sm:$0xff] }
 0x1e6   :  { %v873_v61 = vsub.f32 %v845_v54, %v859_v53  ;;  %v860_v33 = vmul.f32 %v2214_v26, %v2214_v26 }
 0x1e7   :  { %1001 = vperm.xlu1 %1239, %v923_v10   ;;  %v735_v2 = vpop.xlane.xlu1 %734  ;;  %v953_v4 = vmul.f32 %v925_v56, %v2157_v30  ;;  %v815_v6 = vpop.xlane.xlu0 %814  ;;  %v910_v10 = vld [vmem:[%s2396_s3 + $0x30] sm:$0xff] }
 0x1e8   :  { %v887_v11 = vadd.f32 0.001, %v873_v61  ;;  %v833_v13 = vmul.f32 0.0051020407, %v735_v2  ;;  %v846_v36 = vmul.f32 0.0051020407, %v815_v6  ;;  %v924_v46 = vmul.f32 %v1255_v20, %v910_v10 }
 0x1e9   :  { %v967_v14 = vsub.f32 %v939_v63, %v953_v4 }
 0x1ea   :  { %1260 = vrsqrt.f32 %v887_v11  ;;  %v861_v38 = vmul.f32 %v833_v13, %v833_v13  ;;  %v874_v53 = vsub.f32 %v846_v36, %v860_v33  ;;  %v952_v61 = vmul.f32 %v924_v46, %v2155_v50 }
 0x1eb   :  { %1109 = vperm.xlu0 %1238, %v967_v14   ;;  %1094 = vperm.xlu1 %1239, %v964_v19   ;;  %v819_v30 = vpop.xlane.xlu1 %818  ;;  %1262 = vrsqrt.f32 %v886_v22  ;;  %v943_v14 = vld [vmem:[%s2397_s4 + $0x58] sm:$0xff]  ;;  %v917_v22 = vld [vmem:[%s2396_s3 + $0x68] sm:$0xff] }
 0x1ec   :  { %v1257_v28 = vpop.eup %1256  ;;  %v847_v39 = vmul.f32 0.0051020407, %v819_v30  ;;  %v888_v4 = vadd.f32 0.001, %v874_v53  ;;  %v966_v50 = vsub.f32 %v938_v41, %v952_v61  ;;  %v914_v30 = vld [vmem:[%s2396_s3 + $0x50] sm:$0xff] }
 0x1ed   :  { %v927_v40 = vmul.f32 %v1257_v28, %v913_v21  ;;  %v1259_v63 = vpop.eup %1258 }
 0x1ee   :  { %v875_v47 = vsub.f32 %v847_v39, %v861_v38 }
 0x1ef   :  { %1021 = vperm.xlu0 %1238, %v927_v40   ;;  %1006 = vperm.xlu1 %1239, %v924_v46   ;;  %v955_v52 = vmul.f32 %v927_v40, %v2175_v44  ;;  %v912_v44 = vld [vmem:[%s2396_s3 + $0x40] sm:$0xff] }
 0x1f0   :  { %v889_v54 = vadd.f32 0.001, %v875_v47  ;;  %v926_v6 = vmul.f32 %v1259_v63, %v912_v44  ;;  %v942_v47 = vld [vmem:[%s2397_s4 + $0x50] sm:$0xff] }
 0x1f1   :  { %v969_v0 = vsub.f32 %v941_v17, %v955_v52  ;;  %v916_v17 = vld [vmem:[%s2396_s3 + $0x60] sm:$0xff] }
 0x1f2   :  { %1264 = vrsqrt.f32 %v889_v54  ;;  %v954_v21 = vmul.f32 %v926_v6, %v2173_v43  ;;  %v945_v43 = vld [vmem:[%s2397_s4 + $0x68] sm:$0xff] }
 0x1f3   :  { %1119 = vperm.xlu0 %1238, %v969_v0   ;;  %1011 = vperm.xlu1 %1239, %v925_v56   ;;  %1266 = vrsqrt.f32 %v888_v4  ;;  %v940_v56 = vld [vmem:[%s2397_s4 + $0x40] sm:$0xff] }
 0x1f4   :  { %v1261_v2 = vpop.eup %1260  ;;  %v968_v28 = vsub.f32 %v940_v56, %v954_v21 }
 0x1f5   :  { %v929_v11 = vmul.f32 %v1261_v2, %v915_v1  ;;  %v1263_v10 = vpop.eup %1262 }
 0x1f6   :  { %v928_v36 = vmul.f32 %v1263_v10, %v914_v30 }
 0x1f7   :  { %1031 = vperm.xlu0 %1238, %v929_v11   ;;  %1104 = vperm.xlu1 %1239, %v966_v50   ;;  %v957_v19 = vmul.f32 %v929_v11, %v2197_v31 }
 0x1f8   :  { %v956_v40 = vmul.f32 %v928_v36, %v2194_v16  ;;  %v944_v16 = vld [vmem:[%s2397_s4 + $0x60] sm:$0xff] }
 0x1f9   :  { %v971_v20 = vsub.f32 %v943_v14, %v957_v19 }
 0x1fa   :  { %v970_v52 = vsub.f32 %v942_v47, %v956_v40 }
 0x1fb   :  { %1129 = vperm.xlu0 %1238, %v971_v20   ;;  %1016 = vperm.xlu1 %1239, %v926_v6  }
 0x1fc   :  { %v1265_v31 = vpop.eup %1264 }
 0x1fd   :  { %v931_v33 = vmul.f32 %v1265_v31, %v917_v22  ;;  %v1267_v46 = vpop.eup %1266 }
 0x1fe   :  { %v930_v53 = vmul.f32 %v1267_v46, %v916_v17 }
 0x1ff   :  { %1114 = vperm.xlu1 %1239, %v968_v28   ;;  %1041 = vperm.xlu0 %1238, %v931_v33   ;;  %v959_v38 = vmul.f32 %v931_v33, %v833_v13 }
 0x200   :  { %v958_v54 = vmul.f32 %v930_v53, %v2214_v26 }
 0x201   :  { %v973_v39 = vsub.f32 %v945_v43, %v959_v38 }
 0x202   :  { %v972_v13 = vsub.f32 %v944_v16, %v958_v54 }
 0x203   :  { %1026 = vperm.xlu1 %1239, %v928_v36   ;;  %1139 = vperm.xlu0 %1238, %v973_v39  }
 0x207   :  { %1124 = vperm.xlu1 %1239, %v970_v52  }
 0x20b   :  { %1036 = vperm.xlu1 %1239, %v930_v53  }
 0x20f   :  { %1134 = vperm.xlu1 %1239, %v972_v13  }
 0x24c   :  { %v982_v0 = vpop.permute.xlu1 %981 }
 0x24d   :  { %v1046_v63 = vmul.f32 %v982_v0, %v1863_v59  ;;  %v1047_v1 = vmul.f32 %v982_v0, %v1892_v15 }
 0x24e   :  { %v977_v61 = vpop.permute.xlu0 %976 }
 0x24f   :  { %v1044_v41 = vmul.f32 %v977_v61, %v1861_v55  ;;  %v1045_v44 = vmul.f32 %v977_v61, %v1880_v9 }
 0x252   :  { %v1080_v2 = vpop.permute.xlu0 %1079  ;;  %v1075_v4 = vpop.permute.xlu1 %1074 }
 0x253   :  { %v1144_v26 = vadd.f32 %v1080_v2, %v1046_v63  ;;  %v1145_v11 = vadd.f32 %v1080_v2, %v1047_v1  ;;  %v1142_v50 = vadd.f32 %v1075_v4, %v1044_v41  ;;  %v1143_v6 = vadd.f32 %v1075_v4, %v1045_v44 }
 0x255   :  { %1172 = vst [vmem:[%s2395_s5 + $0x10] sm:$0xff] %v1144_v26  ;;  %1173 = vst.msk [vmem:[%s2395_s5 + $0x18] sm:$0xff] %vm624_vm1, %v1145_v11 }
 0x256   :  { %1170 = vst [vmem:[%s2395_s5] sm:$0xff] %v1142_v50  ;;  %1171 = vst.msk [vmem:[%s2395_s5 + $0x8] sm:$0xff] %vm624_vm1, %v1143_v6  ;;  %v987_v55 = vpop.permute.xlu1 %986 }
 0x257   :  { %v1048_v19 = vmul.f32 %v987_v55, %v1873_v3  ;;  %v1049_v20 = vmul.f32 %v987_v55, %v1918_v35 }
 0x25a   :  { %v992_v59 = vpop.permute.xlu1 %991  ;;  %v1090_v14 = vpop.permute.xlu0 %1089 }
 0x25b   :  { %v1050_v9 = vmul.f32 %v992_v59, %v1875_v7  ;;  %v1051_v15 = vmul.f32 %v992_v59, %v1932_v42 }
 0x25d   :  { %v1148_v21 = vadd.f32 %v1090_v14, %v1050_v9  ;;  %v1149_v10 = vadd.f32 %v1090_v14, %v1051_v15 }
 0x25e   :  { %v1085_v56 = vpop.permute.xlu1 %1084 }
 0x25f   :  { %1176 = vst [vmem:[%s2395_s5 + $0x30] sm:$0xff] %v1148_v21  ;;  %1177 = vst.msk [vmem:[%s2395_s5 + $0x38] sm:$0xff] %vm624_vm1, %v1149_v10  ;;  %v1146_v7 = vadd.f32 %v1085_v56, %v1048_v19  ;;  %v1147_v22 = vadd.f32 %v1085_v56, %v1049_v20 }
 0x261   :  { %1174 = vst [vmem:[%s2395_s5 + $0x20] sm:$0xff] %v1146_v7  ;;  %1175 = vst.msk [vmem:[%s2395_s5 + $0x28] sm:$0xff] %vm624_vm1, %v1147_v22 }
 0x262   :  { %v997_v3 = vpop.permute.xlu1 %996  ;;  %v1100_v35 = vpop.permute.xlu0 %1099 }
 0x263   :  { %v1052_v28 = vmul.f32 %v997_v3, %v1907_v25  ;;  %v1053_v33 = vmul.f32 %v997_v3, %v1956_v23 }
 0x266   :  { %v1002_v42 = vpop.permute.xlu1 %1001 }
 0x267   :  { %v1054_v30 = vmul.f32 %v1002_v42, %v1911_v32  ;;  %v1055_v31 = vmul.f32 %v1002_v42, %v1970_v8 }
 0x269   :  { %v1152_v36 = vadd.f32 %v1100_v35, %v1054_v30  ;;  %v1153_v43 = vadd.f32 %v1100_v35, %v1055_v31 }
 0x26a   :  { %v1110_v38 = vpop.permute.xlu0 %1109  ;;  %v1095_v39 = vpop.permute.xlu1 %1094 }
 0x26b   :  { %1180 = vst [vmem:[%s2395_s5 + $0x50] sm:$0xff] %v1152_v36  ;;  %1181 = vst.msk [vmem:[%s2395_s5 + $0x58] sm:$0xff] %vm624_vm1, %v1153_v43  ;;  %v1150_v32 = vadd.f32 %v1095_v39, %v1052_v28  ;;  %v1151_v40 = vadd.f32 %v1095_v39, %v1053_v33 }
 0x26d   :  { %1178 = vst [vmem:[%s2395_s5 + $0x40] sm:$0xff] %v1150_v32  ;;  %1179 = vst.msk [vmem:[%s2395_s5 + $0x48] sm:$0xff] %vm624_vm1, %v1151_v40 }
 0x26e   :  { %v1022_v25 = vpop.permute.xlu0 %1021  ;;  %v1007_v23 = vpop.permute.xlu1 %1006 }
 0x26f   :  { %v1062_v8 = vmul.f32 %v1022_v25, %v1987_v27  ;;  %v1063_v46 = vmul.f32 %v1022_v25, %v2048_v12  ;;  %v1056_v13 = vmul.f32 %v1007_v23, %v1945_v51  ;;  %v1057_v0 = vmul.f32 %v1007_v23, %v1994_v29 }
 0x272   :  { %v1120_v47 = vpop.permute.xlu0 %1119  ;;  %v1012_v17 = vpop.permute.xlu1 %1011 }
 0x273   :  { %v1160_v52 = vadd.f32 %v1120_v47, %v1062_v8  ;;  %v1161_v53 = vadd.f32 %v1120_v47, %v1063_v46  ;;  %v1058_v54 = vmul.f32 %v1012_v17, %v1949_v58  ;;  %v1059_v16 = vmul.f32 %v1012_v17, %v2010_v48 }
 0x275   :  { %1188 = vst [vmem:[%s2395_s5 + $0x90] sm:$0xff] %v1160_v52  ;;  %1189 = vst.msk [vmem:[%s2395_s5 + $0x98] sm:$0xff] %vm624_vm1, %v1161_v53  ;;  %v1156_v27 = vadd.f32 %v1110_v38, %v1058_v54  ;;  %v1157_v12 = vadd.f32 %v1110_v38, %v1059_v16 }
 0x276   :  { %v1032_v61 = vpop.permute.xlu0 %1031  ;;  %v1105_v63 = vpop.permute.xlu1 %1104 }
 0x277   :  { %1184 = vst [vmem:[%s2395_s5 + $0x70] sm:$0xff] %v1156_v27  ;;  %1185 = vst.msk [vmem:[%s2395_s5 + $0x78] sm:$0xff] %vm624_vm1, %v1157_v12  ;;  %v1154_v51 = vadd.f32 %v1105_v63, %v1056_v13  ;;  %v1155_v58 = vadd.f32 %v1105_v63, %v1057_v0  ;;  %v1066_v29 = vmul.f32 %v1032_v61, %v2027_v60 }
 0x278   :  { %v1067_v48 = vmul.f32 %v1032_v61, %v2086_v45 }
 0x279   :  { %1182 = vst [vmem:[%s2395_s5 + $0x60] sm:$0xff] %v1154_v51  ;;  %1183 = vst.msk [vmem:[%s2395_s5 + $0x68] sm:$0xff] %vm624_vm1, %v1155_v58 }
 0x27a   :  { %v1130_v1 = vpop.permute.xlu0 %1129  ;;  %v1017_v41 = vpop.permute.xlu1 %1016 }
 0x27b   :  { %v1164_v44 = vadd.f32 %v1130_v1, %v1066_v29  ;;  %v1165_v2 = vadd.f32 %v1130_v1, %v1067_v48  ;;  %v1060_v60 = vmul.f32 %v1017_v41, %v1983_v18  ;;  %v1061_v45 = vmul.f32 %v1017_v41, %v2032_v62 }
 0x27d   :  { %1192 = vst [vmem:[%s2395_s5 + $0xb0] sm:$0xff] %v1164_v44  ;;  %1193 = vst.msk [vmem:[%s2395_s5 + $0xb8] sm:$0xff] %vm624_vm1, %v1165_v2 }
 0x27e   :  { %v1042_v4 = vpop.permute.xlu0 %1041  ;;  %v1115_v26 = vpop.permute.xlu1 %1114 }
 0x27f   :  { %v1158_v11 = vadd.f32 %v1115_v26, %v1060_v60  ;;  %v1159_v50 = vadd.f32 %v1115_v26, %v1061_v45  ;;  %v1070_v6 = vmul.f32 %v1042_v4, %v2065_v34  ;;  %v1071_v55 = vmul.f32 %v1042_v4, %v2116_v5 }
 0x281   :  { %1186 = vst [vmem:[%s2395_s5 + $0x80] sm:$0xff] %v1158_v11  ;;  %1187 = vst.msk [vmem:[%s2395_s5 + $0x88] sm:$0xff] %vm624_vm1, %v1159_v50 }
 0x282   :  { %v1140_v18 = vpop.permute.xlu0 %1139  ;;  %v1027_v59 = vpop.permute.xlu1 %1026 }
 0x283   :  { %v1168_v62 = vadd.f32 %v1140_v18, %v1070_v6  ;;  %v1169_v9 = vadd.f32 %v1140_v18, %v1071_v55  ;;  %v1064_v34 = vmul.f32 %v1027_v59, %v2021_v49  ;;  %v1065_v5 = vmul.f32 %v1027_v59, %v2070_v37 }
 0x285   :  { %1196 = vst [vmem:[%s2395_s5 + $0xd0] sm:$0xff] %v1168_v62  ;;  %1197 = vst.msk [vmem:[%s2395_s5 + $0xd8] sm:$0xff] %vm624_vm1, %v1169_v9 }
 0x286   :  { %v1125_v15 = vpop.permute.xlu1 %1124 }
 0x287   :  { %v1162_v14 = vadd.f32 %v1125_v15, %v1064_v34  ;;  %v1163_v19 = vadd.f32 %v1125_v15, %v1065_v5 }
 0x289   :  { %1190 = vst [vmem:[%s2395_s5 + $0xa0] sm:$0xff] %v1162_v14  ;;  %1191 = vst.msk [vmem:[%s2395_s5 + $0xa8] sm:$0xff] %vm624_vm1, %v1163_v19 }
 0x28a   :  { %v1037_v20 = vpop.permute.xlu1 %1036 }
 0x28b   :  { %v1068_v21 = vmul.f32 %v1037_v20, %v2060_v24  ;;  %v1069_v10 = vmul.f32 %v1037_v20, %v2104_v57 }
 0x28e   :  { %v1135_v49 = vpop.permute.xlu1 %1134 }
 0x28f   :  { %v1166_v56 = vadd.f32 %v1135_v49, %v1068_v21  ;;  %v1167_v37 = vadd.f32 %v1135_v49, %v1069_v10 }
 0x291   :  { %1194 = vst [vmem:[%s2395_s5 + $0xc0] sm:$0xff] %v1166_v56  ;;  %1195 = vst.msk [vmem:[%s2395_s5 + $0xc8] sm:$0xff] %vm624_vm1, %v1167_v37 }

</bundles_post_ra>
